<compile_context>
chip_gen: v5e
topology: v5e:2x2
jax: 0.10.0
libtpu: 0.0.40
codegen_flags: <defaults>
</compile_context>

<pallas_src>
import functools

import jax
import jax.numpy as jnp
from jax.experimental import pallas as pl
from jax.experimental.pallas import tpu as pltpu


def _round_up(x, m):
    return (x + m - 1) // m * m


def yolo_loss_kernel(out_ref, tgt_ref, loss_ref, iou_ref, acc_ref, *, coord, noobj):
    f32 = jnp.float32

    def ch(ref, c):  # one channel row -> (tile_rows, 128), upcast to f32
        return ref[c].astype(f32)

    # ---- object / no-object masks (target confidence, channel 4) --------
    t_conf1 = ch(tgt_ref, 4)
    t_conf2 = ch(tgt_ref, 9)
    obj = (t_conf1 > 0).astype(f32)
    no_obj = (t_conf1 == 0).astype(f32)

    # ---- classes: SSE + first-argmax match, unrolled VPU chain ----------
    oc = ch(out_ref, 10)
    tc = ch(tgt_ref, 10)
    class_sse = (oc - tc) ** 2
    best_o, best_t = oc, tc
    best_oi = jnp.zeros_like(oc)
    best_ti = jnp.zeros_like(tc)
    for c in range(1, 20):
        oc = ch(out_ref, 10 + c)
        tc = ch(tgt_ref, 10 + c)
        class_sse = class_sse + (oc - tc) ** 2
        take_o = oc > best_o          # strict '>' == torch.max first-max tie-break
        best_oi = jnp.where(take_o, f32(c), best_oi)
        best_o = jnp.where(take_o, oc, best_o)
        take_t = tc > best_t
        best_ti = jnp.where(take_t, f32(c), best_ti)
        best_t = jnp.where(take_t, tc, best_t)
    hit_vec = (best_oi == best_ti).astype(f32)

    # ---- IoU of the 2 predicted boxes vs target box 1 --------------------
    t1x = ch(tgt_ref, 0)
    t1y = ch(tgt_ref, 1)
    t1w = ch(tgt_ref, 2)
    t1h = ch(tgt_ref, 3)
    tcx = t1x / 7.0
    tcy = t1y / 7.0
    tx1 = tcx - 0.5 * t1w
    ty1 = tcy - 0.5 * t1h
    tx2 = tcx + 0.5 * t1w
    ty2 = tcy + 0.5 * t1h
    t_area = (tx2 - tx1) * (ty2 - ty1)

    def iou_vs_target(x, y, w, h):
        cx = x / 7.0
        cy = y / 7.0
        x1 = cx - 0.5 * w
        y1 = cy - 0.5 * h
        x2 = cx + 0.5 * w
        y2 = cy + 0.5 * h
        iw = jnp.maximum(jnp.minimum(x2, tx2) - jnp.maximum(x1, tx1), 0.0)
        ih = jnp.maximum(jnp.minimum(y2, ty2) - jnp.maximum(y1, ty1), 0.0)
        inter = iw * ih
        area = (x2 - x1) * (y2 - y1)
        union = area + t_area - inter
        # epsilon guard: zero-area (padded / degenerate) cells -> iou = 0, not NaN
        return inter / jnp.maximum(union, 1e-12)

    b1x, b1y, b1w, b1h = ch(out_ref, 0), ch(out_ref, 1), ch(out_ref, 2), ch(out_ref, 3)
    b1c = ch(out_ref, 4)
    b2x, b2y, b2w, b2h = ch(out_ref, 5), ch(out_ref, 6), ch(out_ref, 7), ch(out_ref, 8)
    b2c = ch(out_ref, 9)

    iou1 = iou_vs_target(b1x, b1y, b1w, b1h)
    iou2 = iou_vs_target(b2x, b2y, b2w, b2h)
    sel2 = iou2 > iou1                 # True -> second predicted box is responsible
    max_iou = jnp.maximum(iou1, iou2)

    lx = jnp.where(sel2, b2x, b1x)
    ly = jnp.where(sel2, b2y, b1y)
    lw = jnp.where(sel2, b2w, b1w)
    lh = jnp.where(sel2, b2h, b1h)
    lc = jnp.where(sel2, b2c, b1c)
    abandon_c = jnp.where(sel2, b1c, b2c)

    # target_boxes[left] semantics of the torch code: pick target box 1 or 2
    tlx = jnp.where(sel2, ch(tgt_ref, 5), t1x)
    tly = jnp.where(sel2, ch(tgt_ref, 6), t1y)
    tlw = jnp.where(sel2, ch(tgt_ref, 7), t1w)
    tlh = jnp.where(sel2, ch(tgt_ref, 8), t1h)

    # Note: sqrt of non-positive predicted w/h is NaN, same as the torch module.
    coord_term = ((lx - tlx) ** 2 + (ly - tly) ** 2
                  + (jnp.sqrt(lw) - jnp.sqrt(tlw)) ** 2
                  + (jnp.sqrt(lh) - jnp.sqrt(tlh)) ** 2)
    conf_term = (lc - max_iou) ** 2
    abandon_term = abandon_c ** 2                       # box_iou at abandoned rows is 0
    noobj_term = (b1c - t_conf1) ** 2 + (b2c - t_conf2) ** 2

    # ---- one fused per-cell loss vector (3 outputs total) ----------------
    loss_vec = (obj * (coord * coord_term + conf_term
                       + noobj * abandon_term + class_sse)
                + no_obj * (noobj * noobj_term))
    iou_vec = obj * max_iou
    acc_vec = obj * hit_vec

    def fold(v):                        # (tile_rows,128) -> (8,128), pure VPU adds
        acc = v[0:8]
        for r in range(8, v.shape[0], 8):
            acc = acc + v[r:r + 8]
        return acc

    loss_ref[0] = fold(loss_vec)
    iou_ref[0] = fold(iou_vec)
    acc_ref[0] = fold(acc_vec)


def custom_loss(output, target, coord=5.0, noobj=0.5):
    B, S1, S2, C = output.shape
    assert C == 30, "YOLOv1 layout expects 30 channels"
    n = B * S1 * S2

    rows = _round_up(n, 128) // 128
    tile_rows = 64 if rows > 64 else _round_up(rows, 8)
    rows_pad = _round_up(rows, tile_rows)
    n_pad = rows_pad * 128
    grid = rows_pad // tile_rows

    def to_channels_first(x):
        flat = x.reshape(n, C)
        if n_pad != n:
            flat = jnp.pad(flat, ((0, n_pad - n), (0, 0)))  # zero pad -> no-obj cells
        return flat.T.reshape(C, rows_pad, 128)

    out_cf = to_channels_first(output)   # kept in input dtype; upcast in-kernel
    tgt_cf = to_channels_first(target)

    kernel = functools.partial(yolo_loss_kernel, coord=float(coord), noobj=float(noobj))
    block_in = pl.BlockSpec((C, tile_rows, 128), lambda i: (0, i, 0))
    block_out = pl.BlockSpec((1, 8, 128), lambda i: (i, 0, 0))
    partial_shape = jax.ShapeDtypeStruct((grid, 8, 128), jnp.float32)

    loss_p, iou_p, hit_p = pl.pallas_call(
        kernel,
        out_shape=(partial_shape, partial_shape, partial_shape),
        grid_spec=pltpu.PrefetchScalarGridSpec(
            num_scalar_prefetch=0,
            grid=(grid,),
            in_specs=[block_in, block_in],
            out_specs=(block_out, block_out, block_out),
        ),
        compiler_params=pltpu.CompilerParams(
            dimension_semantics=("parallel",)),
    )(out_cf, tgt_cf)

    loss = jnp.sum(loss_p)
    sum_iou = jnp.sum(iou_p)
    acc = jnp.round(jnp.sum(hit_p)).astype(jnp.int32)
    return loss, sum_iou, acc


# ---------------------------------------------------------------------------
# Pure-JAX reference (same dense-mask reformulation) used for validation only.
# ---------------------------------------------------------------------------
def _corners(box):
    cx = box[:, 0:1] / 7.0
    cy = box[:, 1:2] / 7.0
    w = box[:, 2:3]
    h = box[:, 3:4]
    return cx - 0.5 * w, cy - 0.5 * h, cx + 0.5 * w, cy + 0.5 * h


def _iou(a, b):
    ax1, ay1, ax2, ay2 = _corners(a)
    bx1, by1, bx2, by2 = _corners(b)
    iw = jnp.maximum(jnp.minimum(ax2, bx2) - jnp.maximum(ax1, bx1), 0.0)
    ih = jnp.maximum(jnp.minimum(ay2, by2) - jnp.maximum(ay1, by1), 0.0)
    inter = iw * ih
    area_a = (ax2 - ax1) * (ay2 - ay1)
    area_b = (bx2 - bx1) * (by2 - by1)
    return inter / (area_a + area_b - inter)


def _reference(output, target, coord=5.0, noobj=0.5):
    B, S1, S2, C = output.shape
    out = output.reshape(-1, C).astype(jnp.float32)
    tgt = target.reshape(-1, C).astype(jnp.float32)
    obj = (tgt[:, 4:5] > 0).astype(jnp.float32)
    no_obj = (tgt[:, 4:5] == 0).astype(jnp.float32)
    oc, tc = out[:, 10:30], tgt[:, 10:30]
    class_loss = jnp.sum(obj * jnp.sum((oc - tc) ** 2, axis=-1, keepdims=True))
    acc = jnp.sum(obj[:, 0] * (jnp.argmax(oc, -1) == jnp.argmax(tc, -1)).astype(jnp.float32))
    b1, b2, t1, t2 = out[:, 0:5], out[:, 5:10], tgt[:, 0:5], tgt[:, 5:10]
    iou1, iou2 = _iou(b1, t1), _iou(b2, t1)
    sel2 = iou2 > iou1
    max_iou = jnp.maximum(iou1, iou2)
    lo = jnp.where(sel2, b2, b1)
    lt = jnp.where(sel2, t2, t1)
    ac = jnp.where(sel2, b1[:, 4:5], b2[:, 4:5])
    coord_loss = jnp.sum(obj * ((lo[:, 0:2] - lt[:, 0:2]) ** 2).sum(-1, keepdims=True)) + \
        jnp.sum(obj * ((jnp.sqrt(lo[:, 2:4]) - jnp.sqrt(lt[:, 2:4])) ** 2).sum(-1, keepdims=True))
    conf_loss = jnp.sum(obj * (lo[:, 4:5] - max_iou) ** 2)
    abandon_loss = jnp.sum(obj * ac ** 2)
    noobj_loss = jnp.sum(no_obj * ((out[:, 4:5] - tgt[:, 4:5]) ** 2 + (out[:, 9:10] - tgt[:, 9:10]) ** 2))
    total = coord * coord_loss + conf_loss + noobj * (noobj_loss + abandon_loss) + class_loss
    return total, jnp.sum(obj * max_iou), acc


if __name__ == "__main__":
    key = jax.random.PRNGKey(0)
    k1, k2, k3 = jax.random.split(key, 3)
    B, S, C = 2, 7, 30   # YOLOv1-style: 7x7 grid, 2 boxes * 5 + 20 classes
    # strictly positive box entries so sqrt() stays real, as the torch code assumes
    output = jax.random.uniform(k1, (B, S, S, C), minval=0.05, maxval=1.0, dtype=jnp.float32)
    target = jax.random.uniform(k2, (B, S, S, C), minval=0.05, maxval=1.0, dtype=jnp.float32)
    obj_mask = jax.random.uniform(k3, (B, S, S)) > 0.6
    target = target.at[..., 4].set(jnp.where(obj_mask, target[..., 4], 0.0))

    loss, sum_iou, acc = custom_loss(output, target, coord=5.0, noobj=0.5)
    jax.block_until_ready((loss, sum_iou, acc))

    ref_loss, ref_iou, ref_acc = _reference(output, target, coord=5.0, noobj=0.5)
    assert jnp.allclose(loss, ref_loss, rtol=1e-5, atol=1e-5), (loss, ref_loss)
    assert jnp.allclose(sum_iou, ref_iou, rtol=1e-5, atol=1e-5), (sum_iou, ref_iou)
    assert int(acc) == int(ref_acc), (acc, ref_acc)

    print("KERNEL_OK")
</pallas_src>

<mosaic_0001>
module attributes {stable_mosaic.version = 11 : i64} {
  func.func @yolo_loss_kernel(%arg0: i32, %arg1: memref<30x8x128xf32, #tpu.memory_space<vmem>>, %arg2: memref<30x8x128xf32, #tpu.memory_space<vmem>>, %arg3: memref<1x8x128xf32, #tpu.memory_space<vmem>>, %arg4: memref<1x8x128xf32, #tpu.memory_space<vmem>>, %arg5: memref<1x8x128xf32, #tpu.memory_space<vmem>>) attributes {dimension_semantics = [#tpu.dimension_semantics<parallel>], iteration_bounds = array<i64: 1>, scalar_prefetch = 0 : i64, scratch_operands = 0 : i64, tpu.core_type = #tpu.core_type<tc>, window_params = [{transform_indices = @transform_0, window_bounds = array<i64: 30, 8, 128>}, {transform_indices = @transform_1, window_bounds = array<i64: 30, 8, 128>}, {transform_indices = @transform_2, window_bounds = array<i64: 1, 8, 128>}, {transform_indices = @transform_3, window_bounds = array<i64: 1, 8, 128>}, {transform_indices = @transform_4, window_bounds = array<i64: 1, 8, 128>}]} {
    %c4 = arith.constant 4 : index
    %c0 = arith.constant 0 : index
    %c0_0 = arith.constant 0 : index
    %0 = vector.load %arg2[%c4, %c0, %c0_0] : memref<30x8x128xf32, #tpu.memory_space<vmem>>, vector<1x8x128xf32>
    %1 = vector.shape_cast %0 : vector<1x8x128xf32> to vector<8x128xf32>
    %c9 = arith.constant 9 : index
    %c0_1 = arith.constant 0 : index
    %c0_2 = arith.constant 0 : index
    %2 = vector.load %arg2[%c9, %c0_1, %c0_2] : memref<30x8x128xf32, #tpu.memory_space<vmem>>, vector<1x8x128xf32>
    %3 = vector.shape_cast %2 : vector<1x8x128xf32> to vector<8x128xf32>
    %cst = arith.constant 0.000000e+00 : f32
    %4 = vector.broadcast %cst : f32 to vector<8x128xf32>
    %5 = arith.cmpf ogt, %1, %4 : vector<8x128xf32>
    %6 = arith.extui %5 : vector<8x128xi1> to vector<8x128xi32>
    %7 = arith.sitofp %6 : vector<8x128xi32> to vector<8x128xf32>
    %cst_3 = arith.constant 0.000000e+00 : f32
    %8 = vector.broadcast %cst_3 : f32 to vector<8x128xf32>
    %9 = arith.cmpf oeq, %1, %8 : vector<8x128xf32>
    %10 = arith.extui %9 : vector<8x128xi1> to vector<8x128xi32>
    %11 = arith.sitofp %10 : vector<8x128xi32> to vector<8x128xf32>
    %c10 = arith.constant 10 : index
    %c0_4 = arith.constant 0 : index
    %c0_5 = arith.constant 0 : index
    %12 = vector.load %arg1[%c10, %c0_4, %c0_5] : memref<30x8x128xf32, #tpu.memory_space<vmem>>, vector<1x8x128xf32>
    %13 = vector.shape_cast %12 : vector<1x8x128xf32> to vector<8x128xf32>
    %c10_6 = arith.constant 10 : index
    %c0_7 = arith.constant 0 : index
    %c0_8 = arith.constant 0 : index
    %14 = vector.load %arg2[%c10_6, %c0_7, %c0_8] : memref<30x8x128xf32, #tpu.memory_space<vmem>>, vector<1x8x128xf32>
    %15 = vector.shape_cast %14 : vector<1x8x128xf32> to vector<8x128xf32>
    %16 = arith.subf %13, %15 : vector<8x128xf32>
    %17 = arith.mulf %16, %16 : vector<8x128xf32>
    %cst_9 = arith.constant 0.000000e+00 : f32
    %18 = vector.broadcast %cst_9 : f32 to vector<8x128xf32>
    %cst_10 = arith.constant 0.000000e+00 : f32
    %19 = vector.broadcast %cst_10 : f32 to vector<8x128xf32>
    %c11 = arith.constant 11 : index
    %c0_11 = arith.constant 0 : index
    %c0_12 = arith.constant 0 : index
    %20 = vector.load %arg1[%c11, %c0_11, %c0_12] : memref<30x8x128xf32, #tpu.memory_space<vmem>>, vector<1x8x128xf32>
    %21 = vector.shape_cast %20 : vector<1x8x128xf32> to vector<8x128xf32>
    %c11_13 = arith.constant 11 : index
    %c0_14 = arith.constant 0 : index
    %c0_15 = arith.constant 0 : index
    %22 = vector.load %arg2[%c11_13, %c0_14, %c0_15] : memref<30x8x128xf32, #tpu.memory_space<vmem>>, vector<1x8x128xf32>
    %23 = vector.shape_cast %22 : vector<1x8x128xf32> to vector<8x128xf32>
    %24 = arith.subf %21, %23 : vector<8x128xf32>
    %25 = arith.mulf %24, %24 : vector<8x128xf32>
    %26 = arith.addf %17, %25 : vector<8x128xf32>
    %27 = arith.cmpf ogt, %21, %13 : vector<8x128xf32>
    %cst_16 = arith.constant 1.000000e+00 : f32
    %28 = vector.broadcast %cst_16 : f32 to vector<8x128xf32>
    %29 = arith.select %27, %28, %18 : vector<8x128xi1>, vector<8x128xf32>
    %30 = arith.select %27, %21, %13 : vector<8x128xi1>, vector<8x128xf32>
    %31 = arith.cmpf ogt, %23, %15 : vector<8x128xf32>
    %cst_17 = arith.constant 1.000000e+00 : f32
    %32 = vector.broadcast %cst_17 : f32 to vector<8x128xf32>
    %33 = arith.select %31, %32, %19 : vector<8x128xi1>, vector<8x128xf32>
    %34 = arith.select %31, %23, %15 : vector<8x128xi1>, vector<8x128xf32>
    %c12 = arith.constant 12 : index
    %c0_18 = arith.constant 0 : index
    %c0_19 = arith.constant 0 : index
    %35 = vector.load %arg1[%c12, %c0_18, %c0_19] : memref<30x8x128xf32, #tpu.memory_space<vmem>>, vector<1x8x128xf32>
    %36 = vector.shape_cast %35 : vector<1x8x128xf32> to vector<8x128xf32>
    %c12_20 = arith.constant 12 : index
    %c0_21 = arith.constant 0 : index
    %c0_22 = arith.constant 0 : index
    %37 = vector.load %arg2[%c12_20, %c0_21, %c0_22] : memref<30x8x128xf32, #tpu.memory_space<vmem>>, vector<1x8x128xf32>
    %38 = vector.shape_cast %37 : vector<1x8x128xf32> to vector<8x128xf32>
    %39 = arith.subf %36, %38 : vector<8x128xf32>
    %40 = arith.mulf %39, %39 : vector<8x128xf32>
    %41 = arith.addf %26, %40 : vector<8x128xf32>
    %42 = arith.cmpf ogt, %36, %30 : vector<8x128xf32>
    %cst_23 = arith.constant 2.000000e+00 : f32
    %43 = vector.broadcast %cst_23 : f32 to vector<8x128xf32>
    %44 = arith.select %42, %43, %29 : vector<8x128xi1>, vector<8x128xf32>
    %45 = arith.select %42, %36, %30 : vector<8x128xi1>, vector<8x128xf32>
    %46 = arith.cmpf ogt, %38, %34 : vector<8x128xf32>
    %cst_24 = arith.constant 2.000000e+00 : f32
    %47 = vector.broadcast %cst_24 : f32 to vector<8x128xf32>
    %48 = arith.select %46, %47, %33 : vector<8x128xi1>, vector<8x128xf32>
    %49 = arith.select %46, %38, %34 : vector<8x128xi1>, vector<8x128xf32>
    %c13 = arith.constant 13 : index
    %c0_25 = arith.constant 0 : index
    %c0_26 = arith.constant 0 : index
    %50 = vector.load %arg1[%c13, %c0_25, %c0_26] : memref<30x8x128xf32, #tpu.memory_space<vmem>>, vector<1x8x128xf32>
    %51 = vector.shape_cast %50 : vector<1x8x128xf32> to vector<8x128xf32>
    %c13_27 = arith.constant 13 : index
    %c0_28 = arith.constant 0 : index
    %c0_29 = arith.constant 0 : index
    %52 = vector.load %arg2[%c13_27, %c0_28, %c0_29] : memref<30x8x128xf32, #tpu.memory_space<vmem>>, vector<1x8x128xf32>
    %53 = vector.shape_cast %52 : vector<1x8x128xf32> to vector<8x128xf32>
    %54 = arith.subf %51, %53 : vector<8x128xf32>
    %55 = arith.mulf %54, %54 : vector<8x128xf32>
    %56 = arith.addf %41, %55 : vector<8x128xf32>
    %57 = arith.cmpf ogt, %51, %45 : vector<8x128xf32>
    %cst_30 = arith.constant 3.000000e+00 : f32
    %58 = vector.broadcast %cst_30 : f32 to vector<8x128xf32>
    %59 = arith.select %57, %58, %44 : vector<8x128xi1>, vector<8x128xf32>
    %60 = arith.select %57, %51, %45 : vector<8x128xi1>, vector<8x128xf32>
    %61 = arith.cmpf ogt, %53, %49 : vector<8x128xf32>
    %cst_31 = arith.constant 3.000000e+00 : f32
    %62 = vector.broadcast %cst_31 : f32 to vector<8x128xf32>
    %63 = arith.select %61, %62, %48 : vector<8x128xi1>, vector<8x128xf32>
    %64 = arith.select %61, %53, %49 : vector<8x128xi1>, vector<8x128xf32>
    %c14 = arith.constant 14 : index
    %c0_32 = arith.constant 0 : index
    %c0_33 = arith.constant 0 : index
    %65 = vector.load %arg1[%c14, %c0_32, %c0_33] : memref<30x8x128xf32, #tpu.memory_space<vmem>>, vector<1x8x128xf32>
    %66 = vector.shape_cast %65 : vector<1x8x128xf32> to vector<8x128xf32>
    %c14_34 = arith.constant 14 : index
    %c0_35 = arith.constant 0 : index
    %c0_36 = arith.constant 0 : index
    %67 = vector.load %arg2[%c14_34, %c0_35, %c0_36] : memref<30x8x128xf32, #tpu.memory_space<vmem>>, vector<1x8x128xf32>
    %68 = vector.shape_cast %67 : vector<1x8x128xf32> to vector<8x128xf32>
    %69 = arith.subf %66, %68 : vector<8x128xf32>
    %70 = arith.mulf %69, %69 : vector<8x128xf32>
    %71 = arith.addf %56, %70 : vector<8x128xf32>
    %72 = arith.cmpf ogt, %66, %60 : vector<8x128xf32>
    %cst_37 = arith.constant 4.000000e+00 : f32
    %73 = vector.broadcast %cst_37 : f32 to vector<8x128xf32>
    %74 = arith.select %72, %73, %59 : vector<8x128xi1>, vector<8x128xf32>
    %75 = arith.select %72, %66, %60 : vector<8x128xi1>, vector<8x128xf32>
    %76 = arith.cmpf ogt, %68, %64 : vector<8x128xf32>
    %cst_38 = arith.constant 4.000000e+00 : f32
    %77 = vector.broadcast %cst_38 : f32 to vector<8x128xf32>
    %78 = arith.select %76, %77, %63 : vector<8x128xi1>, vector<8x128xf32>
    %79 = arith.select %76, %68, %64 : vector<8x128xi1>, vector<8x128xf32>
    %c15 = arith.constant 15 : index
    %c0_39 = arith.constant 0 : index
    %c0_40 = arith.constant 0 : index
    %80 = vector.load %arg1[%c15, %c0_39, %c0_40] : memref<30x8x128xf32, #tpu.memory_space<vmem>>, vector<1x8x128xf32>
    %81 = vector.shape_cast %80 : vector<1x8x128xf32> to vector<8x128xf32>
    %c15_41 = arith.constant 15 : index
    %c0_42 = arith.constant 0 : index
    %c0_43 = arith.constant 0 : index
    %82 = vector.load %arg2[%c15_41, %c0_42, %c0_43] : memref<30x8x128xf32, #tpu.memory_space<vmem>>, vector<1x8x128xf32>
    %83 = vector.shape_cast %82 : vector<1x8x128xf32> to vector<8x128xf32>
    %84 = arith.subf %81, %83 : vector<8x128xf32>
    %85 = arith.mulf %84, %84 : vector<8x128xf32>
    %86 = arith.addf %71, %85 : vector<8x128xf32>
    %87 = arith.cmpf ogt, %81, %75 : vector<8x128xf32>
    %cst_44 = arith.constant 5.000000e+00 : f32
    %88 = vector.broadcast %cst_44 : f32 to vector<8x128xf32>
    %89 = arith.select %87, %88, %74 : vector<8x128xi1>, vector<8x128xf32>
    %90 = arith.select %87, %81, %75 : vector<8x128xi1>, vector<8x128xf32>
    %91 = arith.cmpf ogt, %83, %79 : vector<8x128xf32>
    %cst_45 = arith.constant 5.000000e+00 : f32
    %92 = vector.broadcast %cst_45 : f32 to vector<8x128xf32>
    %93 = arith.select %91, %92, %78 : vector<8x128xi1>, vector<8x128xf32>
    %94 = arith.select %91, %83, %79 : vector<8x128xi1>, vector<8x128xf32>
    %c16 = arith.constant 16 : index
    %c0_46 = arith.constant 0 : index
    %c0_47 = arith.constant 0 : index
    %95 = vector.load %arg1[%c16, %c0_46, %c0_47] : memref<30x8x128xf32, #tpu.memory_space<vmem>>, vector<1x8x128xf32>
    %96 = vector.shape_cast %95 : vector<1x8x128xf32> to vector<8x128xf32>
    %c16_48 = arith.constant 16 : index
    %c0_49 = arith.constant 0 : index
    %c0_50 = arith.constant 0 : index
    %97 = vector.load %arg2[%c16_48, %c0_49, %c0_50] : memref<30x8x128xf32, #tpu.memory_space<vmem>>, vector<1x8x128xf32>
    %98 = vector.shape_cast %97 : vector<1x8x128xf32> to vector<8x128xf32>
    %99 = arith.subf %96, %98 : vector<8x128xf32>
    %100 = arith.mulf %99, %99 : vector<8x128xf32>
    %101 = arith.addf %86, %100 : vector<8x128xf32>
    %102 = arith.cmpf ogt, %96, %90 : vector<8x128xf32>
    %cst_51 = arith.constant 6.000000e+00 : f32
    %103 = vector.broadcast %cst_51 : f32 to vector<8x128xf32>
    %104 = arith.select %102, %103, %89 : vector<8x128xi1>, vector<8x128xf32>
    %105 = arith.select %102, %96, %90 : vector<8x128xi1>, vector<8x128xf32>
    %106 = arith.cmpf ogt, %98, %94 : vector<8x128xf32>
    %cst_52 = arith.constant 6.000000e+00 : f32
    %107 = vector.broadcast %cst_52 : f32 to vector<8x128xf32>
    %108 = arith.select %106, %107, %93 : vector<8x128xi1>, vector<8x128xf32>
    %109 = arith.select %106, %98, %94 : vector<8x128xi1>, vector<8x128xf32>
    %c17 = arith.constant 17 : index
    %c0_53 = arith.constant 0 : index
    %c0_54 = arith.constant 0 : index
    %110 = vector.load %arg1[%c17, %c0_53, %c0_54] : memref<30x8x128xf32, #tpu.memory_space<vmem>>, vector<1x8x128xf32>
    %111 = vector.shape_cast %110 : vector<1x8x128xf32> to vector<8x128xf32>
    %c17_55 = arith.constant 17 : index
    %c0_56 = arith.constant 0 : index
    %c0_57 = arith.constant 0 : index
    %112 = vector.load %arg2[%c17_55, %c0_56, %c0_57] : memref<30x8x128xf32, #tpu.memory_space<vmem>>, vector<1x8x128xf32>
    %113 = vector.shape_cast %112 : vector<1x8x128xf32> to vector<8x128xf32>
    %114 = arith.subf %111, %113 : vector<8x128xf32>
    %115 = arith.mulf %114, %114 : vector<8x128xf32>
    %116 = arith.addf %101, %115 : vector<8x128xf32>
    %117 = arith.cmpf ogt, %111, %105 : vector<8x128xf32>
    %cst_58 = arith.constant 7.000000e+00 : f32
    %118 = vector.broadcast %cst_58 : f32 to vector<8x128xf32>
    %119 = arith.select %117, %118, %104 : vector<8x128xi1>, vector<8x128xf32>
    %120 = arith.select %117, %111, %105 : vector<8x128xi1>, vector<8x128xf32>
    %121 = arith.cmpf ogt, %113, %109 : vector<8x128xf32>
    %cst_59 = arith.constant 7.000000e+00 : f32
    %122 = vector.broadcast %cst_59 : f32 to vector<8x128xf32>
    %123 = arith.select %121, %122, %108 : vector<8x128xi1>, vector<8x128xf32>
    %124 = arith.select %121, %113, %109 : vector<8x128xi1>, vector<8x128xf32>
    %c18 = arith.constant 18 : index
    %c0_60 = arith.constant 0 : index
    %c0_61 = arith.constant 0 : index
    %125 = vector.load %arg1[%c18, %c0_60, %c0_61] : memref<30x8x128xf32, #tpu.memory_space<vmem>>, vector<1x8x128xf32>
    %126 = vector.shape_cast %125 : vector<1x8x128xf32> to vector<8x128xf32>
    %c18_62 = arith.constant 18 : index
    %c0_63 = arith.constant 0 : index
    %c0_64 = arith.constant 0 : index
    %127 = vector.load %arg2[%c18_62, %c0_63, %c0_64] : memref<30x8x128xf32, #tpu.memory_space<vmem>>, vector<1x8x128xf32>
    %128 = vector.shape_cast %127 : vector<1x8x128xf32> to vector<8x128xf32>
    %129 = arith.subf %126, %128 : vector<8x128xf32>
    %130 = arith.mulf %129, %129 : vector<8x128xf32>
    %131 = arith.addf %116, %130 : vector<8x128xf32>
    %132 = arith.cmpf ogt, %126, %120 : vector<8x128xf32>
    %cst_65 = arith.constant 8.000000e+00 : f32
    %133 = vector.broadcast %cst_65 : f32 to vector<8x128xf32>
    %134 = arith.select %132, %133, %119 : vector<8x128xi1>, vector<8x128xf32>
    %135 = arith.select %132, %126, %120 : vector<8x128xi1>, vector<8x128xf32>
    %136 = arith.cmpf ogt, %128, %124 : vector<8x128xf32>
    %cst_66 = arith.constant 8.000000e+00 : f32
    %137 = vector.broadcast %cst_66 : f32 to vector<8x128xf32>
    %138 = arith.select %136, %137, %123 : vector<8x128xi1>, vector<8x128xf32>
    %139 = arith.select %136, %128, %124 : vector<8x128xi1>, vector<8x128xf32>
    %c19 = arith.constant 19 : index
    %c0_67 = arith.constant 0 : index
    %c0_68 = arith.constant 0 : index
    %140 = vector.load %arg1[%c19, %c0_67, %c0_68] : memref<30x8x128xf32, #tpu.memory_space<vmem>>, vector<1x8x128xf32>
    %141 = vector.shape_cast %140 : vector<1x8x128xf32> to vector<8x128xf32>
    %c19_69 = arith.constant 19 : index
    %c0_70 = arith.constant 0 : index
    %c0_71 = arith.constant 0 : index
    %142 = vector.load %arg2[%c19_69, %c0_70, %c0_71] : memref<30x8x128xf32, #tpu.memory_space<vmem>>, vector<1x8x128xf32>
    %143 = vector.shape_cast %142 : vector<1x8x128xf32> to vector<8x128xf32>
    %144 = arith.subf %141, %143 : vector<8x128xf32>
    %145 = arith.mulf %144, %144 : vector<8x128xf32>
    %146 = arith.addf %131, %145 : vector<8x128xf32>
    %147 = arith.cmpf ogt, %141, %135 : vector<8x128xf32>
    %cst_72 = arith.constant 9.000000e+00 : f32
    %148 = vector.broadcast %cst_72 : f32 to vector<8x128xf32>
    %149 = arith.select %147, %148, %134 : vector<8x128xi1>, vector<8x128xf32>
    %150 = arith.select %147, %141, %135 : vector<8x128xi1>, vector<8x128xf32>
    %151 = arith.cmpf ogt, %143, %139 : vector<8x128xf32>
    %cst_73 = arith.constant 9.000000e+00 : f32
    %152 = vector.broadcast %cst_73 : f32 to vector<8x128xf32>
    %153 = arith.select %151, %152, %138 : vector<8x128xi1>, vector<8x128xf32>
    %154 = arith.select %151, %143, %139 : vector<8x128xi1>, vector<8x128xf32>
    %c20 = arith.constant 20 : index
    %c0_74 = arith.constant 0 : index
    %c0_75 = arith.constant 0 : index
    %155 = vector.load %arg1[%c20, %c0_74, %c0_75] : memref<30x8x128xf32, #tpu.memory_space<vmem>>, vector<1x8x128xf32>
    %156 = vector.shape_cast %155 : vector<1x8x128xf32> to vector<8x128xf32>
    %c20_76 = arith.constant 20 : index
    %c0_77 = arith.constant 0 : index
    %c0_78 = arith.constant 0 : index
    %157 = vector.load %arg2[%c20_76, %c0_77, %c0_78] : memref<30x8x128xf32, #tpu.memory_space<vmem>>, vector<1x8x128xf32>
    %158 = vector.shape_cast %157 : vector<1x8x128xf32> to vector<8x128xf32>
    %159 = arith.subf %156, %158 : vector<8x128xf32>
    %160 = arith.mulf %159, %159 : vector<8x128xf32>
    %161 = arith.addf %146, %160 : vector<8x128xf32>
    %162 = arith.cmpf ogt, %156, %150 : vector<8x128xf32>
    %cst_79 = arith.constant 1.000000e+01 : f32
    %163 = vector.broadcast %cst_79 : f32 to vector<8x128xf32>
    %164 = arith.select %162, %163, %149 : vector<8x128xi1>, vector<8x128xf32>
    %165 = arith.select %162, %156, %150 : vector<8x128xi1>, vector<8x128xf32>
    %166 = arith.cmpf ogt, %158, %154 : vector<8x128xf32>
    %cst_80 = arith.constant 1.000000e+01 : f32
    %167 = vector.broadcast %cst_80 : f32 to vector<8x128xf32>
    %168 = arith.select %166, %167, %153 : vector<8x128xi1>, vector<8x128xf32>
    %169 = arith.select %166, %158, %154 : vector<8x128xi1>, vector<8x128xf32>
    %c21 = arith.constant 21 : index
    %c0_81 = arith.constant 0 : index
    %c0_82 = arith.constant 0 : index
    %170 = vector.load %arg1[%c21, %c0_81, %c0_82] : memref<30x8x128xf32, #tpu.memory_space<vmem>>, vector<1x8x128xf32>
    %171 = vector.shape_cast %170 : vector<1x8x128xf32> to vector<8x128xf32>
    %c21_83 = arith.constant 21 : index
    %c0_84 = arith.constant 0 : index
    %c0_85 = arith.constant 0 : index
    %172 = vector.load %arg2[%c21_83, %c0_84, %c0_85] : memref<30x8x128xf32, #tpu.memory_space<vmem>>, vector<1x8x128xf32>
    %173 = vector.shape_cast %172 : vector<1x8x128xf32> to vector<8x128xf32>
    %174 = arith.subf %171, %173 : vector<8x128xf32>
    %175 = arith.mulf %174, %174 : vector<8x128xf32>
    %176 = arith.addf %161, %175 : vector<8x128xf32>
    %177 = arith.cmpf ogt, %171, %165 : vector<8x128xf32>
    %cst_86 = arith.constant 1.100000e+01 : f32
    %178 = vector.broadcast %cst_86 : f32 to vector<8x128xf32>
    %179 = arith.select %177, %178, %164 : vector<8x128xi1>, vector<8x128xf32>
    %180 = arith.select %177, %171, %165 : vector<8x128xi1>, vector<8x128xf32>
    %181 = arith.cmpf ogt, %173, %169 : vector<8x128xf32>
    %cst_87 = arith.constant 1.100000e+01 : f32
    %182 = vector.broadcast %cst_87 : f32 to vector<8x128xf32>
    %183 = arith.select %181, %182, %168 : vector<8x128xi1>, vector<8x128xf32>
    %184 = arith.select %181, %173, %169 : vector<8x128xi1>, vector<8x128xf32>
    %c22 = arith.constant 22 : index
    %c0_88 = arith.constant 0 : index
    %c0_89 = arith.constant 0 : index
    %185 = vector.load %arg1[%c22, %c0_88, %c0_89] : memref<30x8x128xf32, #tpu.memory_space<vmem>>, vector<1x8x128xf32>
    %186 = vector.shape_cast %185 : vector<1x8x128xf32> to vector<8x128xf32>
    %c22_90 = arith.constant 22 : index
    %c0_91 = arith.constant 0 : index
    %c0_92 = arith.constant 0 : index
    %187 = vector.load %arg2[%c22_90, %c0_91, %c0_92] : memref<30x8x128xf32, #tpu.memory_space<vmem>>, vector<1x8x128xf32>
    %188 = vector.shape_cast %187 : vector<1x8x128xf32> to vector<8x128xf32>
    %189 = arith.subf %186, %188 : vector<8x128xf32>
    %190 = arith.mulf %189, %189 : vector<8x128xf32>
    %191 = arith.addf %176, %190 : vector<8x128xf32>
    %192 = arith.cmpf ogt, %186, %180 : vector<8x128xf32>
    %cst_93 = arith.constant 1.200000e+01 : f32
    %193 = vector.broadcast %cst_93 : f32 to vector<8x128xf32>
    %194 = arith.select %192, %193, %179 : vector<8x128xi1>, vector<8x128xf32>
    %195 = arith.select %192, %186, %180 : vector<8x128xi1>, vector<8x128xf32>
    %196 = arith.cmpf ogt, %188, %184 : vector<8x128xf32>
    %cst_94 = arith.constant 1.200000e+01 : f32
    %197 = vector.broadcast %cst_94 : f32 to vector<8x128xf32>
    %198 = arith.select %196, %197, %183 : vector<8x128xi1>, vector<8x128xf32>
    %199 = arith.select %196, %188, %184 : vector<8x128xi1>, vector<8x128xf32>
    %c23 = arith.constant 23 : index
    %c0_95 = arith.constant 0 : index
    %c0_96 = arith.constant 0 : index
    %200 = vector.load %arg1[%c23, %c0_95, %c0_96] : memref<30x8x128xf32, #tpu.memory_space<vmem>>, vector<1x8x128xf32>
    %201 = vector.shape_cast %200 : vector<1x8x128xf32> to vector<8x128xf32>
    %c23_97 = arith.constant 23 : index
    %c0_98 = arith.constant 0 : index
    %c0_99 = arith.constant 0 : index
    %202 = vector.load %arg2[%c23_97, %c0_98, %c0_99] : memref<30x8x128xf32, #tpu.memory_space<vmem>>, vector<1x8x128xf32>
    %203 = vector.shape_cast %202 : vector<1x8x128xf32> to vector<8x128xf32>
    %204 = arith.subf %201, %203 : vector<8x128xf32>
    %205 = arith.mulf %204, %204 : vector<8x128xf32>
    %206 = arith.addf %191, %205 : vector<8x128xf32>
    %207 = arith.cmpf ogt, %201, %195 : vector<8x128xf32>
    %cst_100 = arith.constant 1.300000e+01 : f32
    %208 = vector.broadcast %cst_100 : f32 to vector<8x128xf32>
    %209 = arith.select %207, %208, %194 : vector<8x128xi1>, vector<8x128xf32>
    %210 = arith.select %207, %201, %195 : vector<8x128xi1>, vector<8x128xf32>
    %211 = arith.cmpf ogt, %203, %199 : vector<8x128xf32>
    %cst_101 = arith.constant 1.300000e+01 : f32
    %212 = vector.broadcast %cst_101 : f32 to vector<8x128xf32>
    %213 = arith.select %211, %212, %198 : vector<8x128xi1>, vector<8x128xf32>
    %214 = arith.select %211, %203, %199 : vector<8x128xi1>, vector<8x128xf32>
    %c24 = arith.constant 24 : index
    %c0_102 = arith.constant 0 : index
    %c0_103 = arith.constant 0 : index
    %215 = vector.load %arg1[%c24, %c0_102, %c0_103] : memref<30x8x128xf32, #tpu.memory_space<vmem>>, vector<1x8x128xf32>
    %216 = vector.shape_cast %215 : vector<1x8x128xf32> to vector<8x128xf32>
    %c24_104 = arith.constant 24 : index
    %c0_105 = arith.constant 0 : index
    %c0_106 = arith.constant 0 : index
    %217 = vector.load %arg2[%c24_104, %c0_105, %c0_106] : memref<30x8x128xf32, #tpu.memory_space<vmem>>, vector<1x8x128xf32>
    %218 = vector.shape_cast %217 : vector<1x8x128xf32> to vector<8x128xf32>
    %219 = arith.subf %216, %218 : vector<8x128xf32>
    %220 = arith.mulf %219, %219 : vector<8x128xf32>
    %221 = arith.addf %206, %220 : vector<8x128xf32>
    %222 = arith.cmpf ogt, %216, %210 : vector<8x128xf32>
    %cst_107 = arith.constant 1.400000e+01 : f32
    %223 = vector.broadcast %cst_107 : f32 to vector<8x128xf32>
    %224 = arith.select %222, %223, %209 : vector<8x128xi1>, vector<8x128xf32>
    %225 = arith.select %222, %216, %210 : vector<8x128xi1>, vector<8x128xf32>
    %226 = arith.cmpf ogt, %218, %214 : vector<8x128xf32>
    %cst_108 = arith.constant 1.400000e+01 : f32
    %227 = vector.broadcast %cst_108 : f32 to vector<8x128xf32>
    %228 = arith.select %226, %227, %213 : vector<8x128xi1>, vector<8x128xf32>
    %229 = arith.select %226, %218, %214 : vector<8x128xi1>, vector<8x128xf32>
    %c25 = arith.constant 25 : index
    %c0_109 = arith.constant 0 : index
    %c0_110 = arith.constant 0 : index
    %230 = vector.load %arg1[%c25, %c0_109, %c0_110] : memref<30x8x128xf32, #tpu.memory_space<vmem>>, vector<1x8x128xf32>
    %231 = vector.shape_cast %230 : vector<1x8x128xf32> to vector<8x128xf32>
    %c25_111 = arith.constant 25 : index
    %c0_112 = arith.constant 0 : index
    %c0_113 = arith.constant 0 : index
    %232 = vector.load %arg2[%c25_111, %c0_112, %c0_113] : memref<30x8x128xf32, #tpu.memory_space<vmem>>, vector<1x8x128xf32>
    %233 = vector.shape_cast %232 : vector<1x8x128xf32> to vector<8x128xf32>
    %234 = arith.subf %231, %233 : vector<8x128xf32>
    %235 = arith.mulf %234, %234 : vector<8x128xf32>
    %236 = arith.addf %221, %235 : vector<8x128xf32>
    %237 = arith.cmpf ogt, %231, %225 : vector<8x128xf32>
    %cst_114 = arith.constant 1.500000e+01 : f32
    %238 = vector.broadcast %cst_114 : f32 to vector<8x128xf32>
    %239 = arith.select %237, %238, %224 : vector<8x128xi1>, vector<8x128xf32>
    %240 = arith.select %237, %231, %225 : vector<8x128xi1>, vector<8x128xf32>
    %241 = arith.cmpf ogt, %233, %229 : vector<8x128xf32>
    %cst_115 = arith.constant 1.500000e+01 : f32
    %242 = vector.broadcast %cst_115 : f32 to vector<8x128xf32>
    %243 = arith.select %241, %242, %228 : vector<8x128xi1>, vector<8x128xf32>
    %244 = arith.select %241, %233, %229 : vector<8x128xi1>, vector<8x128xf32>
    %c26 = arith.constant 26 : index
    %c0_116 = arith.constant 0 : index
    %c0_117 = arith.constant 0 : index
    %245 = vector.load %arg1[%c26, %c0_116, %c0_117] : memref<30x8x128xf32, #tpu.memory_space<vmem>>, vector<1x8x128xf32>
    %246 = vector.shape_cast %245 : vector<1x8x128xf32> to vector<8x128xf32>
    %c26_118 = arith.constant 26 : index
    %c0_119 = arith.constant 0 : index
    %c0_120 = arith.constant 0 : index
    %247 = vector.load %arg2[%c26_118, %c0_119, %c0_120] : memref<30x8x128xf32, #tpu.memory_space<vmem>>, vector<1x8x128xf32>
    %248 = vector.shape_cast %247 : vector<1x8x128xf32> to vector<8x128xf32>
    %249 = arith.subf %246, %248 : vector<8x128xf32>
    %250 = arith.mulf %249, %249 : vector<8x128xf32>
    %251 = arith.addf %236, %250 : vector<8x128xf32>
    %252 = arith.cmpf ogt, %246, %240 : vector<8x128xf32>
    %cst_121 = arith.constant 1.600000e+01 : f32
    %253 = vector.broadcast %cst_121 : f32 to vector<8x128xf32>
    %254 = arith.select %252, %253, %239 : vector<8x128xi1>, vector<8x128xf32>
    %255 = arith.select %252, %246, %240 : vector<8x128xi1>, vector<8x128xf32>
    %256 = arith.cmpf ogt, %248, %244 : vector<8x128xf32>
    %cst_122 = arith.constant 1.600000e+01 : f32
    %257 = vector.broadcast %cst_122 : f32 to vector<8x128xf32>
    %258 = arith.select %256, %257, %243 : vector<8x128xi1>, vector<8x128xf32>
    %259 = arith.select %256, %248, %244 : vector<8x128xi1>, vector<8x128xf32>
    %c27 = arith.constant 27 : index
    %c0_123 = arith.constant 0 : index
    %c0_124 = arith.constant 0 : index
    %260 = vector.load %arg1[%c27, %c0_123, %c0_124] : memref<30x8x128xf32, #tpu.memory_space<vmem>>, vector<1x8x128xf32>
    %261 = vector.shape_cast %260 : vector<1x8x128xf32> to vector<8x128xf32>
    %c27_125 = arith.constant 27 : index
    %c0_126 = arith.constant 0 : index
    %c0_127 = arith.constant 0 : index
    %262 = vector.load %arg2[%c27_125, %c0_126, %c0_127] : memref<30x8x128xf32, #tpu.memory_space<vmem>>, vector<1x8x128xf32>
    %263 = vector.shape_cast %262 : vector<1x8x128xf32> to vector<8x128xf32>
    %264 = arith.subf %261, %263 : vector<8x128xf32>
    %265 = arith.mulf %264, %264 : vector<8x128xf32>
    %266 = arith.addf %251, %265 : vector<8x128xf32>
    %267 = arith.cmpf ogt, %261, %255 : vector<8x128xf32>
    %cst_128 = arith.constant 1.700000e+01 : f32
    %268 = vector.broadcast %cst_128 : f32 to vector<8x128xf32>
    %269 = arith.select %267, %268, %254 : vector<8x128xi1>, vector<8x128xf32>
    %270 = arith.select %267, %261, %255 : vector<8x128xi1>, vector<8x128xf32>
    %271 = arith.cmpf ogt, %263, %259 : vector<8x128xf32>
    %cst_129 = arith.constant 1.700000e+01 : f32
    %272 = vector.broadcast %cst_129 : f32 to vector<8x128xf32>
    %273 = arith.select %271, %272, %258 : vector<8x128xi1>, vector<8x128xf32>
    %274 = arith.select %271, %263, %259 : vector<8x128xi1>, vector<8x128xf32>
    %c28 = arith.constant 28 : index
    %c0_130 = arith.constant 0 : index
    %c0_131 = arith.constant 0 : index
    %275 = vector.load %arg1[%c28, %c0_130, %c0_131] : memref<30x8x128xf32, #tpu.memory_space<vmem>>, vector<1x8x128xf32>
    %276 = vector.shape_cast %275 : vector<1x8x128xf32> to vector<8x128xf32>
    %c28_132 = arith.constant 28 : index
    %c0_133 = arith.constant 0 : index
    %c0_134 = arith.constant 0 : index
    %277 = vector.load %arg2[%c28_132, %c0_133, %c0_134] : memref<30x8x128xf32, #tpu.memory_space<vmem>>, vector<1x8x128xf32>
    %278 = vector.shape_cast %277 : vector<1x8x128xf32> to vector<8x128xf32>
    %279 = arith.subf %276, %278 : vector<8x128xf32>
    %280 = arith.mulf %279, %279 : vector<8x128xf32>
    %281 = arith.addf %266, %280 : vector<8x128xf32>
    %282 = arith.cmpf ogt, %276, %270 : vector<8x128xf32>
    %cst_135 = arith.constant 1.800000e+01 : f32
    %283 = vector.broadcast %cst_135 : f32 to vector<8x128xf32>
    %284 = arith.select %282, %283, %269 : vector<8x128xi1>, vector<8x128xf32>
    %285 = arith.select %282, %276, %270 : vector<8x128xi1>, vector<8x128xf32>
    %286 = arith.cmpf ogt, %278, %274 : vector<8x128xf32>
    %cst_136 = arith.constant 1.800000e+01 : f32
    %287 = vector.broadcast %cst_136 : f32 to vector<8x128xf32>
    %288 = arith.select %286, %287, %273 : vector<8x128xi1>, vector<8x128xf32>
    %289 = arith.select %286, %278, %274 : vector<8x128xi1>, vector<8x128xf32>
    %c29 = arith.constant 29 : index
    %c0_137 = arith.constant 0 : index
    %c0_138 = arith.constant 0 : index
    %290 = vector.load %arg1[%c29, %c0_137, %c0_138] : memref<30x8x128xf32, #tpu.memory_space<vmem>>, vector<1x8x128xf32>
    %291 = vector.shape_cast %290 : vector<1x8x128xf32> to vector<8x128xf32>
    %c29_139 = arith.constant 29 : index
    %c0_140 = arith.constant 0 : index
    %c0_141 = arith.constant 0 : index
    %292 = vector.load %arg2[%c29_139, %c0_140, %c0_141] : memref<30x8x128xf32, #tpu.memory_space<vmem>>, vector<1x8x128xf32>
    %293 = vector.shape_cast %292 : vector<1x8x128xf32> to vector<8x128xf32>
    %294 = arith.subf %291, %293 : vector<8x128xf32>
    %295 = arith.mulf %294, %294 : vector<8x128xf32>
    %296 = arith.addf %281, %295 : vector<8x128xf32>
    %297 = arith.cmpf ogt, %291, %285 : vector<8x128xf32>
    %cst_142 = arith.constant 1.900000e+01 : f32
    %298 = vector.broadcast %cst_142 : f32 to vector<8x128xf32>
    %299 = arith.select %297, %298, %284 : vector<8x128xi1>, vector<8x128xf32>
    %300 = arith.cmpf ogt, %293, %289 : vector<8x128xf32>
    %cst_143 = arith.constant 1.900000e+01 : f32
    %301 = vector.broadcast %cst_143 : f32 to vector<8x128xf32>
    %302 = arith.select %300, %301, %288 : vector<8x128xi1>, vector<8x128xf32>
    %303 = arith.cmpf oeq, %299, %302 : vector<8x128xf32>
    %304 = arith.extui %303 : vector<8x128xi1> to vector<8x128xi32>
    %305 = arith.sitofp %304 : vector<8x128xi32> to vector<8x128xf32>
    %c0_144 = arith.constant 0 : index
    %c0_145 = arith.constant 0 : index
    %c0_146 = arith.constant 0 : index
    %306 = vector.load %arg2[%c0_144, %c0_145, %c0_146] : memref<30x8x128xf32, #tpu.memory_space<vmem>>, vector<1x8x128xf32>
    %307 = vector.shape_cast %306 : vector<1x8x128xf32> to vector<8x128xf32>
    %c1 = arith.constant 1 : index
    %c0_147 = arith.constant 0 : index
    %c0_148 = arith.constant 0 : index
    %308 = vector.load %arg2[%c1, %c0_147, %c0_148] : memref<30x8x128xf32, #tpu.memory_space<vmem>>, vector<1x8x128xf32>
    %309 = vector.shape_cast %308 : vector<1x8x128xf32> to vector<8x128xf32>
    %c2 = arith.constant 2 : index
    %c0_149 = arith.constant 0 : index
    %c0_150 = arith.constant 0 : index
    %310 = vector.load %arg2[%c2, %c0_149, %c0_150] : memref<30x8x128xf32, #tpu.memory_space<vmem>>, vector<1x8x128xf32>
    %311 = vector.shape_cast %310 : vector<1x8x128xf32> to vector<8x128xf32>
    %c3 = arith.constant 3 : index
    %c0_151 = arith.constant 0 : index
    %c0_152 = arith.constant 0 : index
    %312 = vector.load %arg2[%c3, %c0_151, %c0_152] : memref<30x8x128xf32, #tpu.memory_space<vmem>>, vector<1x8x128xf32>
    %313 = vector.shape_cast %312 : vector<1x8x128xf32> to vector<8x128xf32>
    %cst_153 = arith.constant 7.000000e+00 : f32
    %314 = vector.broadcast %cst_153 : f32 to vector<8x128xf32>
    %315 = arith.divf %307, %314 : vector<8x128xf32>
    %cst_154 = arith.constant 7.000000e+00 : f32
    %316 = vector.broadcast %cst_154 : f32 to vector<8x128xf32>
    %317 = arith.divf %309, %316 : vector<8x128xf32>
    %cst_155 = arith.constant 5.000000e-01 : f32
    %318 = vector.broadcast %cst_155 : f32 to vector<8x128xf32>
    %319 = arith.mulf %318, %311 : vector<8x128xf32>
    %320 = arith.subf %315, %319 : vector<8x128xf32>
    %cst_156 = arith.constant 5.000000e-01 : f32
    %321 = vector.broadcast %cst_156 : f32 to vector<8x128xf32>
    %322 = arith.mulf %321, %313 : vector<8x128xf32>
    %323 = arith.subf %317, %322 : vector<8x128xf32>
    %cst_157 = arith.constant 5.000000e-01 : f32
    %324 = vector.broadcast %cst_157 : f32 to vector<8x128xf32>
    %325 = arith.mulf %324, %311 : vector<8x128xf32>
    %326 = arith.addf %315, %325 : vector<8x128xf32>
    %cst_158 = arith.constant 5.000000e-01 : f32
    %327 = vector.broadcast %cst_158 : f32 to vector<8x128xf32>
    %328 = arith.mulf %327, %313 : vector<8x128xf32>
    %329 = arith.addf %317, %328 : vector<8x128xf32>
    %330 = arith.subf %326, %320 : vector<8x128xf32>
    %331 = arith.subf %329, %323 : vector<8x128xf32>
    %332 = arith.mulf %330, %331 : vector<8x128xf32>
    %c0_159 = arith.constant 0 : index
    %c0_160 = arith.constant 0 : index
    %c0_161 = arith.constant 0 : index
    %333 = vector.load %arg1[%c0_159, %c0_160, %c0_161] : memref<30x8x128xf32, #tpu.memory_space<vmem>>, vector<1x8x128xf32>
    %334 = vector.shape_cast %333 : vector<1x8x128xf32> to vector<8x128xf32>
    %c1_162 = arith.constant 1 : index
    %c0_163 = arith.constant 0 : index
    %c0_164 = arith.constant 0 : index
    %335 = vector.load %arg1[%c1_162, %c0_163, %c0_164] : memref<30x8x128xf32, #tpu.memory_space<vmem>>, vector<1x8x128xf32>
    %336 = vector.shape_cast %335 : vector<1x8x128xf32> to vector<8x128xf32>
    %c2_165 = arith.constant 2 : index
    %c0_166 = arith.constant 0 : index
    %c0_167 = arith.constant 0 : index
    %337 = vector.load %arg1[%c2_165, %c0_166, %c0_167] : memref<30x8x128xf32, #tpu.memory_space<vmem>>, vector<1x8x128xf32>
    %338 = vector.shape_cast %337 : vector<1x8x128xf32> to vector<8x128xf32>
    %c3_168 = arith.constant 3 : index
    %c0_169 = arith.constant 0 : index
    %c0_170 = arith.constant 0 : index
    %339 = vector.load %arg1[%c3_168, %c0_169, %c0_170] : memref<30x8x128xf32, #tpu.memory_space<vmem>>, vector<1x8x128xf32>
    %340 = vector.shape_cast %339 : vector<1x8x128xf32> to vector<8x128xf32>
    %c4_171 = arith.constant 4 : index
    %c0_172 = arith.constant 0 : index
    %c0_173 = arith.constant 0 : index
    %341 = vector.load %arg1[%c4_171, %c0_172, %c0_173] : memref<30x8x128xf32, #tpu.memory_space<vmem>>, vector<1x8x128xf32>
    %342 = vector.shape_cast %341 : vector<1x8x128xf32> to vector<8x128xf32>
    %c5 = arith.constant 5 : index
    %c0_174 = arith.constant 0 : index
    %c0_175 = arith.constant 0 : index
    %343 = vector.load %arg1[%c5, %c0_174, %c0_175] : memref<30x8x128xf32, #tpu.memory_space<vmem>>, vector<1x8x128xf32>
    %344 = vector.shape_cast %343 : vector<1x8x128xf32> to vector<8x128xf32>
    %c6 = arith.constant 6 : index
    %c0_176 = arith.constant 0 : index
    %c0_177 = arith.constant 0 : index
    %345 = vector.load %arg1[%c6, %c0_176, %c0_177] : memref<30x8x128xf32, #tpu.memory_space<vmem>>, vector<1x8x128xf32>
    %346 = vector.shape_cast %345 : vector<1x8x128xf32> to vector<8x128xf32>
    %c7 = arith.constant 7 : index
    %c0_178 = arith.constant 0 : index
    %c0_179 = arith.constant 0 : index
    %347 = vector.load %arg1[%c7, %c0_178, %c0_179] : memref<30x8x128xf32, #tpu.memory_space<vmem>>, vector<1x8x128xf32>
    %348 = vector.shape_cast %347 : vector<1x8x128xf32> to vector<8x128xf32>
    %c8 = arith.constant 8 : index
    %c0_180 = arith.constant 0 : index
    %c0_181 = arith.constant 0 : index
    %349 = vector.load %arg1[%c8, %c0_180, %c0_181] : memref<30x8x128xf32, #tpu.memory_space<vmem>>, vector<1x8x128xf32>
    %350 = vector.shape_cast %349 : vector<1x8x128xf32> to vector<8x128xf32>
    %c9_182 = arith.constant 9 : index
    %c0_183 = arith.constant 0 : index
    %c0_184 = arith.constant 0 : index
    %351 = vector.load %arg1[%c9_182, %c0_183, %c0_184] : memref<30x8x128xf32, #tpu.memory_space<vmem>>, vector<1x8x128xf32>
    %352 = vector.shape_cast %351 : vector<1x8x128xf32> to vector<8x128xf32>
    %cst_185 = arith.constant 7.000000e+00 : f32
    %353 = vector.broadcast %cst_185 : f32 to vector<8x128xf32>
    %354 = arith.divf %334, %353 : vector<8x128xf32>
    %cst_186 = arith.constant 7.000000e+00 : f32
    %355 = vector.broadcast %cst_186 : f32 to vector<8x128xf32>
    %356 = arith.divf %336, %355 : vector<8x128xf32>
    %cst_187 = arith.constant 5.000000e-01 : f32
    %357 = vector.broadcast %cst_187 : f32 to vector<8x128xf32>
    %358 = arith.mulf %357, %338 : vector<8x128xf32>
    %359 = arith.subf %354, %358 : vector<8x128xf32>
    %cst_188 = arith.constant 5.000000e-01 : f32
    %360 = vector.broadcast %cst_188 : f32 to vector<8x128xf32>
    %361 = arith.mulf %360, %340 : vector<8x128xf32>
    %362 = arith.subf %356, %361 : vector<8x128xf32>
    %cst_189 = arith.constant 5.000000e-01 : f32
    %363 = vector.broadcast %cst_189 : f32 to vector<8x128xf32>
    %364 = arith.mulf %363, %338 : vector<8x128xf32>
    %365 = arith.addf %354, %364 : vector<8x128xf32>
    %cst_190 = arith.constant 5.000000e-01 : f32
    %366 = vector.broadcast %cst_190 : f32 to vector<8x128xf32>
    %367 = arith.mulf %366, %340 : vector<8x128xf32>
    %368 = arith.addf %356, %367 : vector<8x128xf32>
    %369 = arith.minimumf %365, %326 : vector<8x128xf32>
    %370 = arith.maximumf %359, %320 : vector<8x128xf32>
    %371 = arith.subf %369, %370 : vector<8x128xf32>
    %cst_191 = arith.constant 0.000000e+00 : f32
    %372 = vector.broadcast %cst_191 : f32 to vector<8x128xf32>
    %373 = arith.maximumf %371, %372 : vector<8x128xf32>
    %374 = arith.minimumf %368, %329 : vector<8x128xf32>
    %375 = arith.maximumf %362, %323 : vector<8x128xf32>
    %376 = arith.subf %374, %375 : vector<8x128xf32>
    %cst_192 = arith.constant 0.000000e+00 : f32
    %377 = vector.broadcast %cst_192 : f32 to vector<8x128xf32>
    %378 = arith.maximumf %376, %377 : vector<8x128xf32>
    %379 = arith.mulf %373, %378 : vector<8x128xf32>
    %380 = arith.subf %365, %359 : vector<8x128xf32>
    %381 = arith.subf %368, %362 : vector<8x128xf32>
    %382 = arith.mulf %380, %381 : vector<8x128xf32>
    %383 = arith.addf %382, %332 : vector<8x128xf32>
    %384 = arith.subf %383, %379 : vector<8x128xf32>
    %cst_193 = arith.constant 9.99999996E-13 : f32
    %385 = vector.broadcast %cst_193 : f32 to vector<8x128xf32>
    %386 = arith.maximumf %384, %385 : vector<8x128xf32>
    %387 = arith.divf %379, %386 : vector<8x128xf32>
    %cst_194 = arith.constant 7.000000e+00 : f32
    %388 = vector.broadcast %cst_194 : f32 to vector<8x128xf32>
    %389 = arith.divf %344, %388 : vector<8x128xf32>
    %cst_195 = arith.constant 7.000000e+00 : f32
    %390 = vector.broadcast %cst_195 : f32 to vector<8x128xf32>
    %391 = arith.divf %346, %390 : vector<8x128xf32>
    %cst_196 = arith.constant 5.000000e-01 : f32
    %392 = vector.broadcast %cst_196 : f32 to vector<8x128xf32>
    %393 = arith.mulf %392, %348 : vector<8x128xf32>
    %394 = arith.subf %389, %393 : vector<8x128xf32>
    %cst_197 = arith.constant 5.000000e-01 : f32
    %395 = vector.broadcast %cst_197 : f32 to vector<8x128xf32>
    %396 = arith.mulf %395, %350 : vector<8x128xf32>
    %397 = arith.subf %391, %396 : vector<8x128xf32>
    %cst_198 = arith.constant 5.000000e-01 : f32
    %398 = vector.broadcast %cst_198 : f32 to vector<8x128xf32>
    %399 = arith.mulf %398, %348 : vector<8x128xf32>
    %400 = arith.addf %389, %399 : vector<8x128xf32>
    %cst_199 = arith.constant 5.000000e-01 : f32
    %401 = vector.broadcast %cst_199 : f32 to vector<8x128xf32>
    %402 = arith.mulf %401, %350 : vector<8x128xf32>
    %403 = arith.addf %391, %402 : vector<8x128xf32>
    %404 = arith.minimumf %400, %326 : vector<8x128xf32>
    %405 = arith.maximumf %394, %320 : vector<8x128xf32>
    %406 = arith.subf %404, %405 : vector<8x128xf32>
    %cst_200 = arith.constant 0.000000e+00 : f32
    %407 = vector.broadcast %cst_200 : f32 to vector<8x128xf32>
    %408 = arith.maximumf %406, %407 : vector<8x128xf32>
    %409 = arith.minimumf %403, %329 : vector<8x128xf32>
    %410 = arith.maximumf %397, %323 : vector<8x128xf32>
    %411 = arith.subf %409, %410 : vector<8x128xf32>
    %cst_201 = arith.constant 0.000000e+00 : f32
    %412 = vector.broadcast %cst_201 : f32 to vector<8x128xf32>
    %413 = arith.maximumf %411, %412 : vector<8x128xf32>
    %414 = arith.mulf %408, %413 : vector<8x128xf32>
    %415 = arith.subf %400, %394 : vector<8x128xf32>
    %416 = arith.subf %403, %397 : vector<8x128xf32>
    %417 = arith.mulf %415, %416 : vector<8x128xf32>
    %418 = arith.addf %417, %332 : vector<8x128xf32>
    %419 = arith.subf %418, %414 : vector<8x128xf32>
    %cst_202 = arith.constant 9.99999996E-13 : f32
    %420 = vector.broadcast %cst_202 : f32 to vector<8x128xf32>
    %421 = arith.maximumf %419, %420 : vector<8x128xf32>
    %422 = arith.divf %414, %421 : vector<8x128xf32>
    %423 = arith.cmpf ogt, %422, %387 : vector<8x128xf32>
    %424 = arith.maximumf %387, %422 : vector<8x128xf32>
    %425 = arith.select %423, %344, %334 : vector<8x128xi1>, vector<8x128xf32>
    %426 = arith.select %423, %346, %336 : vector<8x128xi1>, vector<8x128xf32>
    %427 = arith.select %423, %348, %338 : vector<8x128xi1>, vector<8x128xf32>
    %428 = arith.select %423, %350, %340 : vector<8x128xi1>, vector<8x128xf32>
    %429 = arith.select %423, %352, %342 : vector<8x128xi1>, vector<8x128xf32>
    %430 = arith.select %423, %342, %352 : vector<8x128xi1>, vector<8x128xf32>
    %c5_203 = arith.constant 5 : index
    %c0_204 = arith.constant 0 : index
    %c0_205 = arith.constant 0 : index
    %431 = vector.load %arg2[%c5_203, %c0_204, %c0_205] : memref<30x8x128xf32, #tpu.memory_space<vmem>>, vector<1x8x128xf32>
    %432 = vector.shape_cast %431 : vector<1x8x128xf32> to vector<8x128xf32>
    %433 = arith.select %423, %432, %307 : vector<8x128xi1>, vector<8x128xf32>
    %c6_206 = arith.constant 6 : index
    %c0_207 = arith.constant 0 : index
    %c0_208 = arith.constant 0 : index
    %434 = vector.load %arg2[%c6_206, %c0_207, %c0_208] : memref<30x8x128xf32, #tpu.memory_space<vmem>>, vector<1x8x128xf32>
    %435 = vector.shape_cast %434 : vector<1x8x128xf32> to vector<8x128xf32>
    %436 = arith.select %423, %435, %309 : vector<8x128xi1>, vector<8x128xf32>
    %c7_209 = arith.constant 7 : index
    %c0_210 = arith.constant 0 : index
    %c0_211 = arith.constant 0 : index
    %437 = vector.load %arg2[%c7_209, %c0_210, %c0_211] : memref<30x8x128xf32, #tpu.memory_space<vmem>>, vector<1x8x128xf32>
    %438 = vector.shape_cast %437 : vector<1x8x128xf32> to vector<8x128xf32>
    %439 = arith.select %423, %438, %311 : vector<8x128xi1>, vector<8x128xf32>
    %c8_212 = arith.constant 8 : index
    %c0_213 = arith.constant 0 : index
    %c0_214 = arith.constant 0 : index
    %440 = vector.load %arg2[%c8_212, %c0_213, %c0_214] : memref<30x8x128xf32, #tpu.memory_space<vmem>>, vector<1x8x128xf32>
    %441 = vector.shape_cast %440 : vector<1x8x128xf32> to vector<8x128xf32>
    %442 = arith.select %423, %441, %313 : vector<8x128xi1>, vector<8x128xf32>
    %443 = arith.subf %425, %433 : vector<8x128xf32>
    %444 = arith.mulf %443, %443 : vector<8x128xf32>
    %445 = arith.subf %426, %436 : vector<8x128xf32>
    %446 = arith.mulf %445, %445 : vector<8x128xf32>
    %447 = arith.addf %444, %446 : vector<8x128xf32>
    %448 = math.sqrt %427 : vector<8x128xf32>
    %449 = math.sqrt %439 : vector<8x128xf32>
    %450 = arith.subf %448, %449 : vector<8x128xf32>
    %451 = arith.mulf %450, %450 : vector<8x128xf32>
    %452 = arith.addf %447, %451 : vector<8x128xf32>
    %453 = math.sqrt %428 : vector<8x128xf32>
    %454 = math.sqrt %442 : vector<8x128xf32>
    %455 = arith.subf %453, %454 : vector<8x128xf32>
    %456 = arith.mulf %455, %455 : vector<8x128xf32>
    %457 = arith.addf %452, %456 : vector<8x128xf32>
    %458 = arith.subf %429, %424 : vector<8x128xf32>
    %459 = arith.mulf %458, %458 : vector<8x128xf32>
    %460 = arith.mulf %430, %430 : vector<8x128xf32>
    %461 = arith.subf %342, %1 : vector<8x128xf32>
    %462 = arith.mulf %461, %461 : vector<8x128xf32>
    %463 = arith.subf %352, %3 : vector<8x128xf32>
    %464 = arith.mulf %463, %463 : vector<8x128xf32>
    %465 = arith.addf %462, %464 : vector<8x128xf32>
    %cst_215 = arith.constant 5.000000e+00 : f32
    %466 = vector.broadcast %cst_215 : f32 to vector<8x128xf32>
    %467 = arith.mulf %466, %457 : vector<8x128xf32>
    %468 = arith.addf %467, %459 : vector<8x128xf32>
    %cst_216 = arith.constant 5.000000e-01 : f32
    %469 = vector.broadcast %cst_216 : f32 to vector<8x128xf32>
    %470 = arith.mulf %469, %460 : vector<8x128xf32>
    %471 = arith.addf %468, %470 : vector<8x128xf32>
    %472 = arith.addf %471, %296 : vector<8x128xf32>
    %473 = arith.mulf %7, %472 : vector<8x128xf32>
    %cst_217 = arith.constant 5.000000e-01 : f32
    %474 = vector.broadcast %cst_217 : f32 to vector<8x128xf32>
    %475 = arith.mulf %474, %465 : vector<8x128xf32>
    %476 = arith.mulf %11, %475 : vector<8x128xf32>
    %477 = arith.addf %473, %476 : vector<8x128xf32>
    %478 = arith.mulf %7, %424 : vector<8x128xf32>
    %479 = arith.mulf %7, %305 : vector<8x128xf32>
    %c0_218 = arith.constant 0 : index
    %c0_219 = arith.constant 0 : index
    %c0_220 = arith.constant 0 : index
    %480 = vector.load %arg3[%c0_218, %c0_219, %c0_220] : memref<1x8x128xf32, #tpu.memory_space<vmem>>, vector<1x8x128xf32>
    %481 = vector.shape_cast %480 : vector<1x8x128xf32> to vector<8x128xf32>
    %482 = vector.shape_cast %477 : vector<8x128xf32> to vector<1x8x128xf32>
    tpu.vector_store %arg3[%c0_218, %c0_219, %c0_220], %482 {strides = array<i32>} : memref<1x8x128xf32, #tpu.memory_space<vmem>>, vector<1x8x128xf32>,
    %c0_221 = arith.constant 0 : index
    %c0_222 = arith.constant 0 : index
    %c0_223 = arith.constant 0 : index
    %483 = vector.load %arg4[%c0_221, %c0_222, %c0_223] : memref<1x8x128xf32, #tpu.memory_space<vmem>>, vector<1x8x128xf32>
    %484 = vector.shape_cast %483 : vector<1x8x128xf32> to vector<8x128xf32>
    %485 = vector.shape_cast %478 : vector<8x128xf32> to vector<1x8x128xf32>
    tpu.vector_store %arg4[%c0_221, %c0_222, %c0_223], %485 {strides = array<i32>} : memref<1x8x128xf32, #tpu.memory_space<vmem>>, vector<1x8x128xf32>,
    %c0_224 = arith.constant 0 : index
    %c0_225 = arith.constant 0 : index
    %c0_226 = arith.constant 0 : index
    %486 = vector.load %arg5[%c0_224, %c0_225, %c0_226] : memref<1x8x128xf32, #tpu.memory_space<vmem>>, vector<1x8x128xf32>
    %487 = vector.shape_cast %486 : vector<1x8x128xf32> to vector<8x128xf32>
    %488 = vector.shape_cast %479 : vector<8x128xf32> to vector<1x8x128xf32>
    tpu.vector_store %arg5[%c0_224, %c0_225, %c0_226], %488 {strides = array<i32>} : memref<1x8x128xf32, #tpu.memory_space<vmem>>, vector<1x8x128xf32>,
    return
  }
  func.func @transform_0(%arg0: i32) -> (i32, i32, i32) {
    %c0_i32 = arith.constant 0 : i32
    %c0_i32_0 = arith.constant 0 : i32
    %c0_i32_1 = arith.constant 0 : i32
    return %c0_i32, %arg0, %c0_i32_0 : i32, i32, i32
  }
  func.func @transform_1(%arg0: i32) -> (i32, i32, i32) {
    %c0_i32 = arith.constant 0 : i32
    %c0_i32_0 = arith.constant 0 : i32
    %c0_i32_1 = arith.constant 0 : i32
    return %c0_i32, %arg0, %c0_i32_0 : i32, i32, i32
  }
  func.func @transform_2(%arg0: i32) -> (i32, i32, i32) {
    %c0_i32 = arith.constant 0 : i32
    %c0_i32_0 = arith.constant 0 : i32
    %c0_i32_1 = arith.constant 0 : i32
    return %arg0, %c0_i32, %c0_i32_0 : i32, i32, i32
  }
  func.func @transform_3(%arg0: i32) -> (i32, i32, i32) {
    %c0_i32 = arith.constant 0 : i32
    %c0_i32_0 = arith.constant 0 : i32
    %c0_i32_1 = arith.constant 0 : i32
    return %arg0, %c0_i32, %c0_i32_0 : i32, i32, i32
  }
  func.func @transform_4(%arg0: i32) -> (i32, i32, i32) {
    %c0_i32 = arith.constant 0 : i32
    %c0_i32_0 = arith.constant 0 : i32
    %c0_i32_1 = arith.constant 0 : i32
    return %arg0, %c0_i32, %c0_i32_0 : i32, i32, i32
  }
}

</mosaic_0001>

<bundles_post_ra>
// kernel: tpu_custom_call.1
= control target key start
LH: loop header
LB: loop body
LE: loop exit
PB: predicated region body
PF: predicated region fallthrough
CT: control target
= control target key end

     0   :  { %10 = vsyncpa [#allocation3], 0  ;;  %s1372_s0 = inlined_call_operand.hbm [shape: f32[30,8,128], index: 0, kind: input, shape index: {}]   ;;  %s1373_s1 = inlined_call_operand.hbm [shape: f32[30,8,128], index: 1, kind: input, shape index: {}]   ;;  %s1374_s2 = inlined_call_operand.hbm [shape: f32[1,8,128], index: 2, kind: output, shape index: {0}]   ;;  %s1375_s3 = inlined_call_operand.hbm [shape: f32[1,8,128], index: 3, kind: output, shape index: {1}]   ;;  %s1376_s4 = inlined_call_operand.hbm [shape: f32[1,8,128], index: 4, kind: output, shape index: {2}]  }
   0x1   :  { %11 = vsyncpa [#allocation6], 0 }
   0x2   :  { %12 = vsyncpa [#allocation4], 0 }
   0x3   :  { %13 = vsyncpa [#allocation9], 0  ;;  %s18_s17 = sshll.u32 %s1372_s0, 4  ;;  %s736_s18 = smov [#allocation2]   ;;  %s19_s17 = int_to_ptr.hbm [resolvable:$true] %s18_s17 }
   0x4   :  { %s20_s19 = sshll.u32 %s736_s18, 4  ;;  %s31_s22 = sshll.u32 %s1373_s1, 4  ;;  %s21_s19 = int_to_ptr.vmem [resolvable:$true] %s20_s19  ;;  %s32_s22 = int_to_ptr.hbm [resolvable:$true] %s31_s22 }
   0x5   :  { %s737_s23 = smov 128   ;;  %s738_s24 = smov 8  }
   0x6   :  { %26 = dma.hbm_to_vmem [thread:$0]  %s19_s17, 3840, %s21_s19, [#allocation3], %s737_s23, %s737_s23, %s738_s24  }
   0x7   :  { %s739_s25 = smov [#allocation5]  }
   0x8   :  { %s33_s26 = sshll.u32 %s739_s25, 4  ;;  %s34_s26 = int_to_ptr.vmem [resolvable:$true] %s33_s26 }
   0x9   :  { %39 = dma.hbm_to_vmem [thread:$0]  %s32_s22, 3840, %s34_s26, [#allocation6], %s737_s23, %s737_s23, %s738_s24  }
   0xa   :  { %728 = dma.done.wait [#allocation3], 3840  }
   0xb   :  { %729 = vsyncadd [#allocation3], 4294963456 }
   0xc   :  { %730 = dma.done.wait [#allocation6], 3840  }
   0xd   :  { %731 = vsyncadd [#allocation6], 4294963456  ;;  %v740_v0 = vmov 7.0   ;;  %v776_v1 = vld [vmem:[#allocation2 + $0x50] sm:$0xff]  ;;  %v778_v2 = vld [vmem:[#allocation5 + $0x50] sm:$0xff]  ;;  %s742_s0 = smov [#allocation8]  }
   0xe   :  { %594 = vrcp.f32 %v740_v0  ;;  %v780_v3 = vld [vmem:[#allocation2 + $0x58] sm:$0xff]  ;;  %v782_v4 = vld [vmem:[#allocation5 + $0x58] sm:$0xff]  ;;  %v62_v6 = vsub.f32 %v776_v1, %v778_v2  ;;  %v790_v8 = vld [vmem:[#allocation2 + $0x60] sm:$0xff]  ;;  %s1207_s1 = sshll.u32 %s742_s0, 4  ;;  %s551_s29 = sshll.u32 %s1375_s3, 4  ;;  %s550_s1 = int_to_ptr.vmem [resolvable:$true] %s1207_s1  ;;  %s552_s29 = int_to_ptr.hbm [resolvable:$true] %s551_s29 }
   0xf   :  { %v68_v7 = vsub.f32 %v780_v3, %v782_v4  ;;  %vm71_vm0 = vcmp.gt.f32.partialorder %v780_v3, %v776_v1  ;;  %v792_v9 = vld [vmem:[#allocation5 + $0x60] sm:$0xff]  ;;  %vm74_vm1 = vcmp.gt.f32.partialorder %v782_v4, %v778_v2  ;;  %v805_v15 = vld [vmem:[#allocation2 + $0x68] sm:$0xff]  ;;  %v807_v16 = vld [vmem:[#allocation5 + $0x68] sm:$0xff]  ;;  %s743_s3 = smov [#allocation7]   ;;  %s540_s7 = sshll.u32 %s1374_s2, 4  ;;  %s541_s7 = int_to_ptr.hbm [resolvable:$true] %s540_s7 }
  0x10   :  { %v63_v11 = vmul.f32 %v62_v6, %v62_v6  ;;  %v801_v13 = vsel %vm71_vm0, %v780_v3, %v776_v1  ;;  %v81_v14 = vsub.f32 %v790_v8, %v792_v9  ;;  %v814_v17 = vsel %vm74_vm1, %v782_v4, %v778_v2  ;;  %v816_v18 = vld [vmem:[#allocation2 + $0x70] sm:$0xff]  ;;  %v818_v19 = vld [vmem:[#allocation5 + $0x70] sm:$0xff]  ;;  %v832_v27 = vld [vmem:[#allocation5 + $0x18] sm:$0xff]  ;;  %s538_s30 = sshll.u32 %s743_s3, 4  ;;  %s744_s8 = smov [#allocation10]   ;;  %s539_s30 = int_to_ptr.vmem [resolvable:$true] %s538_s30 }
  0x11   :  { %v69_v12 = vmul.f32 %v68_v7, %v68_v7  ;;  %vm84_vm2 = vcmp.gt.f32.partialorder %v790_v8, %v801_v13  ;;  %v94_v22 = vsub.f32 %v805_v15, %v807_v16  ;;  %vm87_vm3 = vcmp.gt.f32.partialorder %v792_v9, %v814_v17  ;;  %v828_v25 = vld [vmem:[#allocation5] sm:$0xff]  ;;  %v830_v26 = vld [vmem:[#allocation5 + $0x10] sm:$0xff]  ;;  %1385 = vst [vmem:[#allocation16_spill] sm:$0xff] %v832_v27  ;;  %v843_v31 = vld [vmem:[#allocation2 + $0x78] sm:$0xff]  ;;  %s560_s9 = sshll.u32 %s744_s8, 4  ;;  %s562_s12 = sshll.u32 %s1376_s4, 4  ;;  %s561_s9 = int_to_ptr.vmem [resolvable:$true] %s560_s9  ;;  %s563_s12 = int_to_ptr.hbm [resolvable:$true] %s562_s12 }
  0x12   :  { %v82_v21 = vmul.f32 %v81_v14, %v81_v14  ;;  %v107_v24 = vsub.f32 %v816_v18, %v818_v19  ;;  %1384 = vst [vmem:[#allocation15_spill] sm:$0xff] %v830_v26  ;;  %v834_v29 = vld [vmem:[#allocation2 + $0x10] sm:$0xff]  ;;  %v841_v30 = vsel %vm84_vm2, %v790_v8, %v801_v13  ;;  %v845_v32 = vld [vmem:[#allocation2 + $0x18] sm:$0xff]  ;;  %v849_v34 = vld [vmem:[#allocation2 + $0x40] sm:$0xff]  ;;  %v856_v36 = vsel %vm87_vm3, %v792_v9, %v814_v17 }
  0x13   :  { %v70_v20 = vadd.f32 %v69_v12, %v63_v11  ;;  %1386 = vst [vmem:[#allocation17_spill] sm:$0xff] %v845_v32  ;;  %v847_v33 = vld [vmem:[#allocation2 + $0x38] sm:$0xff]  ;;  %v95_v37 = vmul.f32 %v94_v22, %v94_v22  ;;  %v860_v40 = vld [vmem:[#allocation2] sm:$0xff]  ;;  %v862_v41 = vld [vmem:[#allocation2 + $0x8] sm:$0xff]  ;;  %v328_v44 = vmul.f32 0.5, %v830_v26  ;;  %v330_v45 = vmul.f32 0.5, %v832_v27 }
  0x14   :  { %v595_v5 = vpop.eup %594  ;;  %1387 = vst [vmem:[#allocation18_spill] sm:$0xff] %v849_v34  ;;  %v858_v38 = vld [vmem:[#allocation5 + $0x8] sm:$0xff]  ;;  %v108_v42 = vmul.f32 %v107_v24, %v107_v24  ;;  %v864_v43 = vld [vmem:[#allocation5 + $0x78] sm:$0xff]  ;;  %v870_v47 = vld [vmem:[#allocation2 + $0x30] sm:$0xff]  ;;  %v358_v48 = vmul.f32 0.5, %v834_v29  ;;  %v360_v50 = vmul.f32 0.5, %v845_v32  ;;  %vm97_vm5 = vcmp.gt.f32.partialorder %v805_v15, %v841_v30 }
  0x15   :  { %v320_v10 = vmul.f32 7.0, %v595_v5  ;;  %vm324_vm4 = vweird.f32 %v595_v5  ;;  %v83_v35 = vadd.f32 %v82_v21, %v70_v20  ;;  %1388 = vst [vmem:[#allocation19_spill] sm:$0xff] %v858_v38  ;;  %v868_v46 = vld [vmem:[#allocation2 + $0x28] sm:$0xff]  ;;  %v396_v51 = vmul.f32 0.5, %v847_v33  ;;  %v938_v2 = vld [vmem:[#allocation2 + $0x90] sm:$0xff]  ;;  %v940_v4 = vld [vmem:[#allocation5 + $0x90] sm:$0xff] }
  0x16   :  { %v398_v52 = vmul.f32 0.5, %v849_v34  ;;  %v120_v58 = vsub.f32 %v843_v31, %v864_v43  ;;  %vm100_vm6 = vcmp.gt.f32.partialorder %v807_v16, %v856_v36 }
  0x17   :  { %v321_v23 = vsub.f32 1.0, %v320_v10  ;;  %v96_v57 = vadd.f32 %v95_v37, %v83_v35 }
  0x19   :  { %v322_v28 = vmul.f32 %v595_v5, %v321_v23 }
  0x1b   :  { %v323_v39 = vadd.f32 %v595_v5, %v322_v28 }
  0x1d   :  { %v325_v49 = vsel %vm324_vm4, %v595_v5, %v323_v39 }
  0x1e   :  { %v326_v53 = vmul.f32 %v325_v49, %v828_v25  ;;  %v327_v54 = vmul.f32 %v325_v49, %v858_v38  ;;  %v356_v55 = vmul.f32 %v860_v40, %v325_v49  ;;  %v357_v56 = vmul.f32 %v862_v41, %v325_v49 }
  0x1f   :  { %v394_v59 = vmul.f32 %v868_v46, %v325_v49  ;;  %v395_v60 = vmul.f32 %v870_v47, %v325_v49 }
  0x20   :  { %v329_v61 = vsub.f32 %v326_v53, %v328_v44  ;;  %v331_v62 = vsub.f32 %v327_v54, %v330_v45  ;;  %v332_v63 = vadd.f32 %v328_v44, %v326_v53  ;;  %v333_v0 = vadd.f32 %v330_v45, %v327_v54  ;;  %v889_v44 = vld [vmem:[#allocation2 + $0x80] sm:$0xff]  ;;  %v891_v45 = vld [vmem:[#allocation5 + $0x80] sm:$0xff] }
  0x21   :  { %v359_v5 = vsub.f32 %v356_v55, %v358_v48  ;;  %v361_v6 = vsub.f32 %v357_v56, %v360_v50  ;;  %v362_v7 = vadd.f32 %v358_v48, %v356_v55  ;;  %v363_v10 = vadd.f32 %v360_v50, %v357_v56 }
  0x22   :  { %v334_v11 = vsub.f32 %v332_v63, %v329_v61  ;;  %v335_v12 = vsub.f32 %v333_v0, %v331_v62  ;;  %v397_v14 = vsub.f32 %v394_v59, %v396_v51  ;;  %v399_v20 = vsub.f32 %v395_v60, %v398_v52 }
  0x23   :  { %v364_v21 = vmin.f32 %v362_v7, %v332_v63  ;;  %v365_v22 = vmax.f32 %v359_v5, %v329_v61  ;;  %v368_v23 = vmin.f32 %v363_v10, %v333_v0  ;;  %v369_v24 = vmax.f32 %v361_v6, %v331_v62 }
  0x24   :  { %v336_v28 = vmul.f32 %v335_v12, %v334_v11  ;;  %v373_v35 = vsub.f32 %v362_v7, %v359_v5  ;;  %v374_v37 = vsub.f32 %v363_v10, %v361_v6  ;;  %v400_v39 = vadd.f32 %v396_v51, %v394_v59 }
  0x25   :  { %v366_v49 = vsub.f32 %v364_v21, %v365_v22  ;;  %v370_v53 = vsub.f32 %v368_v23, %v369_v24  ;;  %v401_v48 = vadd.f32 %v398_v52, %v395_v60  ;;  %v403_v50 = vmax.f32 %v397_v14, %v329_v61 }
  0x26   :  { %v375_v54 = vmul.f32 %v374_v37, %v373_v35  ;;  %v402_v55 = vmin.f32 %v400_v39, %v332_v63  ;;  %v407_v56 = vmax.f32 %v399_v20, %v331_v62  ;;  %v411_v27 = vsub.f32 %v400_v39, %v397_v14  ;;  %v927_v14 = vld [vmem:[#allocation2 + $0x88] sm:$0xff] }
  0x27   :  { %v367_v34 = vmax.f32 %v366_v49, 0.0  ;;  %v371_v32 = vmax.f32 %v370_v53, 0.0  ;;  %v406_v26 = vmin.f32 %v401_v48, %v333_v0  ;;  %v412_v38 = vsub.f32 %v401_v48, %v399_v20  ;;  %v929_v20 = vld [vmem:[#allocation5 + $0x88] sm:$0xff]  ;;  %v971_v53 = vld [vmem:[#allocation5 + $0x98] sm:$0xff] }
  0x28   :  { %v121_v11 = vmul.f32 %v120_v58, %v120_v58  ;;  %v133_v51 = vsub.f32 %v889_v44, %v891_v45  ;;  %v376_v59 = vadd.f32 %v375_v54, %v336_v28  ;;  %v404_v5 = vsub.f32 %v402_v55, %v403_v50  ;;  %v969_v49 = vld [vmem:[#allocation2 + $0x98] sm:$0xff] }
  0x29   :  { %v109_v6 = vadd.f32 %v108_v42, %v96_v57  ;;  %v895_v7 = vmul.f32 %v371_v32, %v367_v34  ;;  %v408_v10 = vsub.f32 %v406_v26, %v407_v56  ;;  %v413_v52 = vmul.f32 %v412_v38, %v411_v27  ;;  %v988_v56 = vld [vmem:[#allocation2 + $0xa0] sm:$0xff] }
  0x2a   :  { %v405_v60 = vmax.f32 %v404_v5, 0.0  ;;  %v903_v58 = vsel %vm97_vm5, %v805_v15, %v841_v30  ;;  %v910_v32 = vsel %vm100_vm6, %v807_v16, %v856_v36  ;;  %v134_v34 = vmul.f32 %v133_v51, %v133_v51  ;;  %v1131_v36 = vld [vmem:[#allocation5 + $0xd8] sm:$0xff] }
  0x2b   :  { %v377_v61 = vsub.f32 %v376_v59, %v895_v7  ;;  %v409_v62 = vmax.f32 %v408_v10, 0.0  ;;  %v414_v26 = vadd.f32 %v413_v52, %v336_v28  ;;  %v122_v27 = vadd.f32 %v121_v11, %v109_v6  ;;  %v990_v11 = vld [vmem:[#allocation5 + $0xa0] sm:$0xff]  ;;  %v1001_v52 = vld [vmem:[#allocation2 + $0xa8] sm:$0xff] }
  0x2c   :  { %v1382_v57 = vmov 0.0   ;;  %vm110_vm7 = vcmp.gt.f32.partialorder %v816_v18, %v903_v58  ;;  %vm113_vm8 = vcmp.gt.f32.partialorder %v818_v19, %v910_v32  ;;  %v146_v22 = vsub.f32 %v927_v14, %v929_v20 }
  0x2d   :  { %v378_v38 = vmax.f32 %v377_v61, 1e-12  ;;  %v912_v42 = vmul.f32 %v409_v62, %v405_v60  ;;  %v72_v63 = vsel %vm71_vm0, 1.0, %v1382_v57  ;;  %v75_v0 = vsel %vm74_vm1, 1.0, %v1382_v57  ;;  %v1003_v60 = vld [vmem:[#allocation5 + $0xa8] sm:$0xff] }
  0x2e   :  { %v85_v1 = vsel %vm84_vm2, 2.0, %v72_v63  ;;  %v135_v3 = vadd.f32 %v134_v34, %v122_v27  ;;  %v947_v28 = vsel %vm110_vm7, %v816_v18, %v903_v58  ;;  %v954_v8 = vsel %vm113_vm8, %v818_v19, %v910_v32  ;;  %v1113_v32 = vld [vmem:[#allocation2 + $0xd0] sm:$0xff] }
  0x2f   :  { %596 = vrcp.f32 %v378_v38  ;;  %v415_v12 = vsub.f32 %v414_v26, %v912_v42  ;;  %v388_v21 = vand.u32 2147483647, %v378_v38  ;;  %v390_v23 = vand.u32 2147483648, %v378_v38 }
  0x30   :  { %v147_v13 = vmul.f32 %v146_v22, %v146_v22  ;;  %v159_v35 = vsub.f32 %v938_v2, %v940_v4  ;;  %vm123_vm9 = vcmp.gt.f32.partialorder %v843_v31, %v947_v28  ;;  %v88_v37 = vsel %vm87_vm3, 2.0, %v75_v0 }
  0x31   :  { %v936_v24 = vmax.f32 %v415_v12, 1e-12  ;;  %v966_v39 = vsel %vm97_vm5, 3.0, %v85_v1  ;;  %vm126_vm10 = vcmp.gt.f32.partialorder %v864_v43, %v954_v8  ;;  %v172_v9 = vsub.f32 %v969_v49, %v971_v53  ;;  %v1020_v12 = vld [vmem:[#allocation2 + $0xb0] sm:$0xff]  ;;  %v1022_v1 = vld [vmem:[#allocation5 + $0xb0] sm:$0xff] }
  0x32   :  { %v148_v50 = vadd.f32 %v147_v13, %v135_v3  ;;  %v160_v54 = vmul.f32 %v159_v35, %v159_v35  ;;  %v982_v15 = vsel %vm123_vm9, %v843_v31, %v947_v28  ;;  %vm384_vm11 = vweird.f32 %v378_v38  ;;  %v1080_v3 = vld [vmem:[#allocation2 + $0xc8] sm:$0xff] }
  0x33   :  { %598 = vrcp.f32 %v936_v24  ;;  %vm984_vm12 = vcmp.eq.f32.partialorder %v388_v21, 8.507059e+37  ;;  %v391_v55 = vor.u32 1.1754944e-38, %v390_v23  ;;  %v173_v59 = vmul.f32 %v172_v9, %v172_v9  ;;  %v1045_v9 = vld [vmem:[#allocation5 + $0xb8] sm:$0xff] }
  0x34   :  { %v161_v51 = vadd.f32 %v160_v54, %v148_v50  ;;  %v185_v5 = vsub.f32 %v988_v56, %v990_v11  ;;  %v999_v6 = vsel %vm126_vm10, %v864_v43, %v954_v8  ;;  %vm136_vm14 = vcmp.gt.f32.partialorder %v889_v44, %v982_v15  ;;  %v1043_v54 = vld [vmem:[#allocation2 + $0xb8] sm:$0xff] }
  0x35   :  { %v597_v48 = vpop.eup %596  ;;  %vm139_vm15 = vcmp.gt.f32.partialorder %v891_v45, %v999_v6  ;;  %v198_v26 = vsub.f32 %v1001_v52, %v1003_v60  ;;  %v1016_v27 = vsel %vm136_vm14, %v889_v44, %v982_v15  ;;  %vm422_vm0 = vweird.f32 %v936_v24  ;;  %v1163_v15 = vld [vmem:[#allocation2 + $0x20] sm:$0xff] }
  0x36   :  { %v380_v17 = vmul.f32 %v597_v48, %v378_v38  ;;  %vm385_vm13 = vweird.f32 %v597_v48  ;;  %v174_v61 = vadd.f32 %v173_v59, %v161_v51  ;;  %v186_v62 = vmul.f32 %v185_v5, %v185_v5 }
  0x37   :  { %v426_v0 = vand.u32 2147483647, %v936_v24  ;;  %vm149_vm1 = vcmp.gt.f32.partialorder %v927_v14, %v1016_v27  ;;  %vm1028_vm2 = vmor %vm384_vm11, %vm385_vm13  ;;  %v199_v23 = vmul.f32 %v198_v26, %v198_v26  ;;  %v1038_v13 = vsel %vm139_vm15, %v891_v45, %v999_v6  ;;  %v1061_v26 = vld [vmem:[#allocation2 + $0xc0] sm:$0xff]  ;;  %v1400_v45 = vld [vmem:[#allocation17_spill] sm:$0xff] }
  0x38   :  { %v381_v10 = vsub.f32 1.0, %v380_v17  ;;  %v187_v22 = vadd.f32 %v186_v62, %v174_v61  ;;  %v428_v50 = vand.u32 2147483648, %v936_v24  ;;  %v211_v38 = vsub.f32 %v1020_v12, %v1022_v1  ;;  %v1401_v6 = vld [vmem:[#allocation18_spill] sm:$0xff] }
  0x39   :  { %v599_v34 = vpop.eup %598  ;;  %v224_v59 = vsub.f32 %v1043_v54, %v1045_v9  ;;  %v1054_v5 = vsel %vm149_vm1, %v927_v14, %v1016_v27  ;;  %vm152_vm4 = vcmp.gt.f32.partialorder %v929_v20, %v1038_v13 }
  0x3a   :  { %v382_v63 = vmul.f32 %v597_v48, %v381_v10  ;;  %v418_v21 = vmul.f32 %v599_v34, %v936_v24  ;;  %vm423_vm3 = vweird.f32 %v599_v34  ;;  %v200_v51 = vadd.f32 %v199_v23, %v187_v22 }
  0x3b   :  { %v101_v10 = vsel %vm100_vm6, 3.0, %v88_v37  ;;  %v212_v62 = vmul.f32 %v211_v38, %v211_v38  ;;  %v225_v57 = vmul.f32 %v224_v59, %v224_v59  ;;  %vm1076_vm5 = vmor %vm422_vm0, %vm423_vm3  ;;  %v429_v37 = vor.u32 1.1754944e-38, %v428_v50  ;;  %v447_v59 = vld [vmem:[#allocation5 + $0x38] sm:$0xff] }
  0x3c   :  { %v383_v35 = vadd.f32 %v597_v48, %v382_v63  ;;  %v419_v17 = vsub.f32 1.0, %v418_v21  ;;  %v1063_v63 = vld [vmem:[#allocation5 + $0xc0] sm:$0xff]  ;;  %vm162_vm6 = vcmp.gt.f32.partialorder %v938_v2, %v1054_v5  ;;  %v111_v24 = vsel %vm110_vm7, 4.0, %v966_v39 }
  0x3d   :  { %v1067_v21 = vld [vmem:[#allocation5 + $0x20] sm:$0xff]  ;;  %v237_v16 = vsub.f32 %v1061_v26, %v1063_v63  ;;  %v1111_v19 = vsel %vm162_vm6, %v938_v2, %v1054_v5 }
  0x3e   :  { %v387_v61 = vsel %vm1028_vm2, %v597_v48, %v383_v35  ;;  %v420_v23 = vmul.f32 %v599_v34, %v419_v17  ;;  %v213_v48 = vadd.f32 %v212_v62, %v200_v51  ;;  %v1082_v35 = vld [vmem:[#allocation5 + $0xc8] sm:$0xff]  ;;  %vm52_vm11 = vcmp.gt.f32.partialorder %v1067_v21, 0.0 }
  0x3f   :  { %v392_v22 = vsel %vm984_vm12, %v391_v55, %v387_v61  ;;  %vm427_vm12 = vcmp.eq.f32.partialorder %v426_v0, 8.507059e+37  ;;  %v114_v55 = vsel %vm113_vm8, 4.0, %v101_v10  ;;  %v250_v38 = vsub.f32 %v1080_v3, %v1082_v35  ;;  %v1115_v0 = vld [vmem:[#allocation5 + $0xd0] sm:$0xff] }
  0x40   :  { %v421_v30 = vadd.f32 %v599_v34, %v420_v23  ;;  %v393_v50 = vmul.f32 %v392_v22, %v895_v7  ;;  %v1102_v17 = vsel %vm152_vm4, %v929_v20, %v1038_v13  ;;  %v226_v58 = vadd.f32 %v225_v57, %v213_v48  ;;  %v441_v57 = vld [vmem:[#allocation5 + $0x28] sm:$0xff]  ;;  %v444_v22 = vld [vmem:[#allocation5 + $0x30] sm:$0xff] }
  0x41   :  { %v238_v39 = vmul.f32 %v237_v16, %v237_v16  ;;  %v124_v51 = vsel %vm123_vm9, 5.0, %v111_v24  ;;  %v127_v10 = vsel %vm126_vm10, 5.0, %v114_v55  ;;  %v1395_v61 = vmov 0.0   ;;  %v1129_v16 = vld [vmem:[#allocation2 + $0xd8] sm:$0xff]  ;;  %v450_v24 = vld [vmem:[#allocation5 + $0x40] sm:$0xff] }
  0x42   :  { %v425_v18 = vsel %vm1076_vm5, %v599_v34, %v421_v30  ;;  %v1127_v62 = vsel %vm52_vm11, 1.0, %v1395_v61  ;;  %v251_v23 = vmul.f32 %v250_v38, %v250_v38  ;;  %vm165_vm7 = vcmp.gt.f32.partialorder %v940_v4, %v1102_v17  ;;  %v1165_v30 = vld [vmem:[#allocation2 + $0x48] sm:$0xff] }
  0x43   :  { %v430_v7 = vsel %vm427_vm12, %v429_v37, %v425_v18  ;;  %vm175_vm8 = vcmp.gt.f32.partialorder %v969_v49, %v1111_v19  ;;  %v239_v43 = vadd.f32 %v238_v39, %v226_v58  ;;  %v137_v28 = vsel %vm136_vm14, 6.0, %v124_v51  ;;  %v1402_v58 = vld [vmem:[#allocation16_spill] sm:$0xff]  ;;  %v1195_v51 = vld [vmem:[#allocation5 + $0xe0] sm:$0xff] }
  0x44   :  { %v431_v34 = vmul.f32 %v430_v7, %v912_v42  ;;  %v263_v42 = vsub.f32 %v1113_v32, %v1115_v0  ;;  %v140_v44 = vsel %vm139_vm15, 6.0, %v127_v10  ;;  %v1193_v7 = vld [vmem:[#allocation2 + $0xe0] sm:$0xff]  ;;  %v167_v20 = vsel %vm165_vm7, %v940_v4, %v1102_v17 }
  0x45   :  { %v153_v10 = vsel %vm152_vm4, 7.0, %v140_v44  ;;  %vm178_vm10 = vcmp.gt.f32.partialorder %v971_v53, %v167_v20 }
  0x46   :  { %vm1137_vm9 = vcmp.gt.f32.partialorder %v431_v34, %v393_v50  ;;  %v433_v18 = vmax.f32 %v393_v50, %v431_v34  ;;  %v252_v34 = vadd.f32 %v251_v23, %v239_v43  ;;  %v1215_v23 = vld [vmem:[#allocation5 + $0xe8] sm:$0xff]  ;;  %v289_v43 = vsub.f32 %v1193_v7, %v1195_v51 }
  0x47   :  { %v434_v8 = vsel %vm1137_vm9, %v868_v46, %v860_v40  ;;  %v435_v37 = vsel %vm1137_vm9, %v870_v47, %v862_v41  ;;  %v1158_v48 = vsel %vm1137_vm9, %v847_v33, %v834_v29  ;;  %v442_v40 = vsel %vm1137_vm9, %v441_v57, %v828_v25  ;;  %v1398_v41 = vld [vmem:[#allocation19_spill] sm:$0xff] }
  0x48   :  { %v445_v46 = vsel %vm1137_vm9, %v444_v22, %v1398_v41  ;;  %v1399_v47 = vld [vmem:[#allocation15_spill] sm:$0xff]  ;;  %v276_v33 = vsub.f32 %v1129_v16, %v1131_v36  ;;  %v1184_v55 = vsel %vm1137_vm9, %v1401_v6, %v1400_v45  ;;  %v452_v38 = vsub.f32 %v434_v8, %v442_v40  ;;  %v1213_v22 = vld [vmem:[#allocation2 + $0xe8] sm:$0xff] }
  0x49   :  { %v1176_v29 = vsel %vm1137_vm9, %v447_v59, %v1399_v47  ;;  %v454_v25 = vsub.f32 %v435_v37, %v445_v46  ;;  %600 = vrsqrt.f32 %v1158_v48  ;;  %v1190_v39 = vsel %vm1137_vm9, %v450_v24, %v1402_v58  ;;  %v51_v45 = vld [vmem:[#allocation5 + $0x48] sm:$0xff] }
  0x4a   :  { %602 = vrsqrt.f32 %v1176_v29  ;;  %v150_v57 = vsel %vm149_vm1, 7.0, %v137_v28  ;;  %v438_v50 = vsel %vm1137_vm9, %v1165_v30, %v1163_v15  ;;  %v264_v59 = vmul.f32 %v263_v42, %v263_v42 }
  0x4b   :  { %v453_v14 = vmul.f32 %v452_v38, %v452_v38  ;;  %v455_v27 = vmul.f32 %v454_v25, %v454_v25  ;;  %604 = vrsqrt.f32 %v1184_v55  ;;  %v277_v13 = vmul.f32 %v276_v33, %v276_v33 }
  0x4c   :  { %606 = vrsqrt.f32 %v1190_v39  ;;  %v1230_v42 = vsel %vm175_vm8, %v969_v49, %v1111_v19  ;;  %v511_v28 = vsub.f32 %v438_v50, %v433_v18  ;;  %v528_v8 = vmul.f32 %v1127_v62, %v433_v18 }
  0x4d   :  { %v163_v37 = vsel %vm162_vm6, 8.0, %v150_v57  ;;  %v166_v24 = vsel %vm165_vm7, 8.0, %v153_v10  ;;  %v467_v40 = vand.u32 2147483648, %v1158_v48  ;;  %v265_v41 = vadd.f32 %v264_v59, %v252_v34 }
  0x4e   :  { %v302_v46 = vsub.f32 %v1213_v22, %v1215_v23  ;;  %v1244_v33 = vadd.f32 %v455_v27, %v453_v14  ;;  %v479_v5 = vand.u32 2147483648, %v1176_v29  ;;  %531 = vst [vmem:[#allocation8] sm:$0xff] %v528_v8  ;;  %v439_v4 = vsel %vm1137_vm9, %v1163_v15, %v1165_v30 }
  0x4f   :  { %v601_v44 = vpop.eup %600  ;;  %vm464_vm13 = vcmp.eq.f32.partialorder %v1158_v48, inf  ;;  %v278_v6 = vadd.f32 %v277_v13, %v265_v41  ;;  %v290_v38 = vmul.f32 %v289_v43, %v289_v43  ;;  %v513_v25 = vmul.f32 %v439_v4, %v439_v4  ;;  %554 = dma.vmem_to_hbm [thread:$0]  %s550_s1, 128, %s552_s29, [#allocation9]  }
  0x50   :  { %v603_v47 = vpop.eup %602  ;;  %v458_v2 = vmul.f32 %v601_v44, %v1158_v48  ;;  %vm466_vm14 = vcmp.eq.f32.partialorder %v1158_v48, 0.0  ;;  %vm476_vm15 = vcmp.eq.f32.partialorder %v1176_v29, inf  ;;  %v494_v57 = vand.u32 2147483648, %v1184_v55 }
  0x51   :  { %v470_v17 = vmul.f32 %v603_v47, %v1176_v29  ;;  %v605_v18 = vpop.eup %604  ;;  %v506_v31 = vand.u32 2147483648, %v1190_v39  ;;  %v1258_v50 = vmul.f32 %v511_v28, %v511_v28  ;;  %vm478_vm0 = vcmp.eq.f32.partialorder %v1176_v29, 0.0 }
  0x52   :  { %v459_v58 = vmul.f32 %v601_v44, %v458_v2  ;;  %v607_v34 = vpop.eup %606  ;;  %v485_v10 = vmul.f32 %v605_v18, %v1184_v55  ;;  %v1262_v14 = vmul.f32 %v302_v46, %v302_v46  ;;  %v514_v27 = vsub.f32 %v1163_v15, %v1067_v21 }
  0x53   :  { %v471_v59 = vmul.f32 %v603_v47, %v470_v17  ;;  %vm491_vm1 = vcmp.eq.f32.partialorder %v1184_v55, inf  ;;  %v497_v43 = vmul.f32 %v607_v34, %v1190_v39  ;;  %v516_v8 = vsub.f32 %v1165_v30, %v51_v45 }
  0x54   :  { %v460_v13 = vmul.f32 0.5, %v459_v58  ;;  %v176_v28 = vsel %vm175_vm8, 9.0, %v163_v37  ;;  %v486_v2 = vmul.f32 %v605_v18, %v485_v10  ;;  %vm493_vm2 = vcmp.eq.f32.partialorder %v1184_v55, 0.0 }
  0x55   :  { %v472_v41 = vmul.f32 0.5, %v471_v59  ;;  %vm503_vm3 = vcmp.eq.f32.partialorder %v1190_v39, inf  ;;  %v1274_v46 = vadd.f32 %v290_v38, %v278_v6  ;;  %v1276_v15 = vmul.f32 0.5, %v513_v25 }
  0x56   :  { %v461_v4 = vsub.f32 1.5, %v460_v13  ;;  %v498_v17 = vmul.f32 %v607_v34, %v497_v43  ;;  %vm505_vm4 = vcmp.eq.f32.partialorder %v1190_v39, 0.0  ;;  %v179_v30 = vsel %vm178_vm10, 9.0, %v166_v24 }
  0x57   :  { %v180_v49 = vsel %vm178_vm10, %v971_v53, %v167_v20  ;;  %v473_v19 = vsub.f32 1.5, %v472_v41  ;;  %v487_v37 = vmul.f32 0.5, %v486_v2  ;;  %vm188_vm5 = vcmp.gt.f32.partialorder %v988_v56, %v1230_v42 }
  0x58   :  { %vm191_vm6 = vcmp.gt.f32.partialorder %v990_v11, %v180_v49  ;;  %v462_v45 = vmul.f32 %v601_v44, %v461_v4  ;;  %v499_v6 = vmul.f32 0.5, %v498_v17  ;;  %v515_v38 = vmul.f32 %v514_v27, %v514_v27 }
  0x59   :  { %v517_v25 = vmul.f32 %v516_v8, %v516_v8  ;;  %v474_v58 = vmul.f32 %v603_v47, %v473_v19  ;;  %v488_v59 = vsub.f32 1.5, %v487_v37  ;;  %v189_v10 = vsel %vm188_vm5, 10.0, %v176_v28 }
  0x5a   :  { %v190_v24 = vsel %vm188_vm5, %v988_v56, %v1230_v42  ;;  %v463_v13 = vmul.f32 %v462_v45, %v1158_v48  ;;  %v500_v53 = vsub.f32 1.5, %v499_v6  ;;  %v192_v20 = vsel %vm191_vm6, 10.0, %v179_v30 }
  0x5b   :  { %v193_v43 = vsel %vm191_vm6, %v990_v11, %v180_v49  ;;  %v475_v41 = vmul.f32 %v474_v58, %v1176_v29  ;;  %v489_v2 = vmul.f32 %v605_v18, %v488_v59  ;;  %vm201_vm11 = vcmp.gt.f32.partialorder %v1001_v52, %v190_v24 }
  0x5c   :  { %vm204_vm12 = vcmp.gt.f32.partialorder %v1003_v60, %v193_v43  ;;  %v465_v44 = vsel %vm464_vm13, %v1158_v48, %v463_v13  ;;  %v501_v47 = vmul.f32 %v607_v34, %v500_v53  ;;  %v202_v27 = vsel %vm201_vm11, 11.0, %v189_v10 }
  0x5d   :  { %v203_v56 = vsel %vm201_vm11, %v1001_v52, %v190_v24  ;;  %v468_v11 = vsel %vm466_vm14, %v467_v40, %v465_v44  ;;  %v477_v42 = vsel %vm476_vm15, %v1176_v29, %v475_v41  ;;  %v490_v18 = vmul.f32 %v489_v2, %v1184_v55 }
  0x5e   :  { %v205_v8 = vsel %vm204_vm12, 11.0, %v192_v20  ;;  %v480_v34 = vsel %vm478_vm0, %v479_v5, %v477_v42  ;;  %v502_v28 = vmul.f32 %v501_v47, %v1190_v39  ;;  %v206_v52 = vsel %vm204_vm12, %v1003_v60, %v193_v43 }
  0x5f   :  { %vm214_vm7 = vcmp.gt.f32.partialorder %v1020_v12, %v203_v56  ;;  %v481_v48 = vsub.f32 %v468_v11, %v480_v34  ;;  %v492_v40 = vsel %vm491_vm1, %v1184_v55, %v490_v18  ;;  %vm55_vm8 = vcmp.eq.f32.partialorder %v1067_v21, 0.0 }
  0x60   :  { %v215_v4 = vsel %vm214_vm7, 12.0, %v202_v27  ;;  %v216_v17 = vsel %vm214_vm7, %v1020_v12, %v203_v56  ;;  %v495_v30 = vsel %vm493_vm2, %v494_v57, %v492_v40  ;;  %v504_v29 = vsel %vm503_vm3, %v1190_v39, %v502_v28 }
  0x61   :  { %vm217_vm9 = vcmp.gt.f32.partialorder %v1022_v1, %v206_v52  ;;  %vm227_vm10 = vcmp.gt.f32.partialorder %v1043_v54, %v216_v17  ;;  %v482_v60 = vmul.f32 %v481_v48, %v481_v48  ;;  %v507_v5 = vsel %vm505_vm4, %v506_v31, %v504_v29 }
  0x62   :  { %v218_v12 = vsel %vm217_vm9, 12.0, %v205_v8  ;;  %v219_v55 = vsel %vm217_vm9, %v1022_v1, %v206_v52  ;;  %v508_v57 = vsub.f32 %v495_v30, %v507_v5  ;;  %v228_v49 = vsel %vm227_vm10, 13.0, %v215_v4 }
  0x63   :  { %v229_v19 = vsel %vm227_vm10, %v1043_v54, %v216_v17  ;;  %vm230_vm13 = vcmp.gt.f32.partialorder %v1045_v9, %v219_v55  ;;  %v483_v37 = vadd.f32 %v482_v60, %v1244_v33  ;;  %v518_v1 = vadd.f32 %v517_v25, %v515_v38 }
  0x64   :  { %v231_v45 = vsel %vm230_vm13, 13.0, %v218_v12  ;;  %v232_v6 = vsel %vm230_vm13, %v1045_v9, %v219_v55  ;;  %vm240_vm14 = vcmp.gt.f32.partialorder %v1061_v26, %v229_v19  ;;  %v509_v58 = vmul.f32 %v508_v57, %v508_v57 }
  0x65   :  { %v241_v59 = vsel %vm240_vm14, 14.0, %v228_v49  ;;  %v242_v39 = vsel %vm240_vm14, %v1061_v26, %v229_v19  ;;  %vm243_vm15 = vcmp.gt.f32.partialorder %v1063_v63, %v232_v6  ;;  %v304_v9 = vadd.f32 %v1262_v14, %v1274_v46 }
  0x66   :  { %v244_v31 = vsel %vm243_vm15, 14.0, %v231_v45  ;;  %v245_v10 = vsel %vm243_vm15, %v1063_v63, %v232_v6  ;;  %vm253_vm0 = vcmp.gt.f32.partialorder %v1080_v3, %v242_v39  ;;  %v510_v54 = vadd.f32 %v509_v58, %v483_v37 }
  0x67   :  { %v254_v24 = vsel %vm253_vm0, 15.0, %v241_v59  ;;  %v255_v33 = vsel %vm253_vm0, %v1080_v3, %v242_v39  ;;  %vm256_vm1 = vcmp.gt.f32.partialorder %v1082_v35, %v245_v10  ;;  %v525_v53 = vmul.f32 0.5, %v518_v1 }
  0x68   :  { %v257_v13 = vsel %vm256_vm1, 15.0, %v244_v31  ;;  %v258_v26 = vsel %vm256_vm1, %v1082_v35, %v245_v10  ;;  %vm266_vm2 = vcmp.gt.f32.partialorder %v1113_v32, %v255_v33  ;;  %v519_v38 = vmul.f32 5.0, %v510_v54 }
  0x69   :  { %v267_v25 = vsel %vm266_vm2, 16.0, %v254_v24  ;;  %v268_v63 = vsel %vm266_vm2, %v1113_v32, %v255_v33  ;;  %vm269_vm3 = vcmp.gt.f32.partialorder %v1115_v0, %v258_v26  ;;  %v583_v35 = vsel %vm55_vm8, 1.0, %v1395_v61 }
  0x6a   :  { %v270_v20 = vsel %vm269_vm3, 16.0, %v257_v13  ;;  %v271_v3 = vsel %vm269_vm3, %v1115_v0, %v258_v26  ;;  %vm279_vm4 = vcmp.gt.f32.partialorder %v1129_v16, %v268_v63  ;;  %v520_v43 = vadd.f32 %v519_v38, %v1258_v50 }
  0x6b   :  { %v280_v14 = vsel %vm279_vm4, 17.0, %v267_v25  ;;  %v281_v46 = vsel %vm279_vm4, %v1129_v16, %v268_v63  ;;  %vm282_vm5 = vcmp.gt.f32.partialorder %v1131_v36, %v271_v3  ;;  %v526_v21 = vmul.f32 %v583_v35, %v525_v53 }
  0x6c   :  { %v283_v32 = vsel %vm282_vm5, 17.0, %v270_v20  ;;  %v284_v41 = vsel %vm282_vm5, %v1131_v36, %v271_v3  ;;  %vm292_vm6 = vcmp.gt.f32.partialorder %v1193_v7, %v281_v46  ;;  %v522_v0 = vadd.f32 %v1276_v15, %v520_v43 }
  0x6d   :  { %v293_v2 = vsel %vm292_vm6, 18.0, %v280_v14  ;;  %v294_v44 = vsel %vm292_vm6, %v1193_v7, %v281_v46  ;;  %vm295_vm11 = vcmp.gt.f32.partialorder %v1195_v51, %v284_v41 }
  0x6e   :  { %v296_v50 = vsel %vm295_vm11, 18.0, %v283_v32  ;;  %v297_v16 = vsel %vm295_vm11, %v1195_v51, %v284_v41  ;;  %vm305_vm12 = vcmp.gt.f32.partialorder %v1213_v22, %v294_v44  ;;  %v523_v47 = vadd.f32 %v522_v0, %v304_v9 }
  0x6f   :  { %v306_v27 = vsel %vm305_vm12, 19.0, %v293_v2  ;;  %vm307_vm7 = vcmp.gt.f32.partialorder %v1215_v23, %v297_v16 }
  0x70   :  { %v308_v36 = vsel %vm307_vm7, 19.0, %v296_v50  ;;  %v524_v7 = vmul.f32 %v1127_v62, %v523_v47 }
  0x71   :  { %vm309_vm8 = vcmp.eq.f32.partialorder %v306_v27, %v308_v36 }
  0x72   :  { %v584_v51 = vsel %vm309_vm8, 1.0, %v1395_v61  ;;  %v527_v22 = vadd.f32 %v526_v21, %v524_v7 }
  0x73   :  { %v529_v23 = vmul.f32 %v584_v51, %v1127_v62 }
  0x74   :  { %530 = vst [vmem:[#allocation7] sm:$0xff] %v527_v22 }
  0x75   :  { %532 = vst [vmem:[#allocation10] sm:$0xff] %v529_v23  ;;  %543 = dma.vmem_to_hbm [thread:$0]  %s539_s30, 128, %s541_s7, [#allocation4]  }
  0x76   :  { %565 = dma.vmem_to_hbm [thread:$0]  %s561_s9, 128, %s563_s12, [#allocation9]  }
  0x77   :  { %732 = dma.done.wait [#allocation4], 128  }
  0x78   :  { %733 = vsyncadd [#allocation4], 4294967168 }
  0x79   :  { %734 = dma.done.wait [#allocation9], 256  }
  0x7a   :  { %735 = vsyncadd [#allocation9], 4294967040 }
  0x7b   :  { %578 = vsyncpa [#allocation3], 1 }
  0x7c   :  { %579 = vsyncpa [#allocation6], 1 }
  0x7d   :  { %580 = vsyncpa [#allocation4], 1 }
  0x7e   :  { %581 = vsyncpa [#allocation9], 1 }

</bundles_post_ra>
